<compile_context>
chip_gen: v7x
topology: tpu7x:2x2x1
jax: 0.10.0
libtpu: 0.0.40
codegen_flags: <defaults>
</compile_context>

<pallas_src>
import functools

import numpy as np
import jax
import jax.numpy as jnp
from jax.experimental import pallas as pl
from jax.experimental.pallas import tpu as pltpu


# ----------------------------------------------------------------------------
# Trace-time constants: resize matrices and conv-tap validity masks
# ----------------------------------------------------------------------------
def _interp_matrix_1d(out_size, in_size):
    """(out_size, in_size) bilinear weights, align_corners=True (as F.interpolate)."""
    m = np.zeros((out_size, in_size), np.float32)
    if out_size == 1:
        m[0, 0] = 1.0
        return m
    src = np.arange(out_size, dtype=np.float64) * (in_size - 1) / (out_size - 1)
    i0 = np.clip(np.floor(src).astype(np.int64), 0, in_size - 1)
    i1 = np.minimum(i0 + 1, in_size - 1)
    frac = src - i0
    for o in range(out_size):
        m[o, i0[o]] += 1.0 - frac[o]
        m[o, i1[o]] += frac[o]
    return m


def _resize_matrix_flat(in_hw, out_hw):
    """Right-multiply matrix R:  x(C, inH*inW) @ R == bilinear_resized(C, outH*outW)."""
    ry = _interp_matrix_1d(out_hw[0], in_hw[0])
    rx = _interp_matrix_1d(out_hw[1], in_hw[1])
    return np.kron(ry, rx).T.astype(np.float32)


def _conv_tap_masks(hs, ws):
    """(9, hs*ws) 0/1 masks: tap (kh, kw) of a 3x3/pad=1 conv valid at flat pos p."""
    yy, xx = np.meshgrid(np.arange(hs), np.arange(ws), indexing="ij")
    yy = yy.reshape(-1)
    xx = xx.reshape(-1)
    m = np.zeros((9, hs * ws), np.float32)
    for kh in range(3):
        for kw in range(3):
            valid = ((yy + kh - 1 >= 0) & (yy + kh - 1 < hs) &
                     (xx + kw - 1 >= 0) & (xx + kw - 1 < ws))
            m[kh * 3 + kw] = valid.astype(np.float32)
    return m


# ----------------------------------------------------------------------------
# Fused kernel (built per (n_conv, shapes) configuration)
# ----------------------------------------------------------------------------
def _build_fused_kernel(n_conv, metas, c0):
    def kernel(*refs):
        # ---- unpack refs: x, per-layer inputs, output, per-layer scratch ----
        idx = 0
        x_ref = refs[idx]; idx += 1
        layer_refs = []
        for i in range(n_conv):
            if i < n_conv - 1:                       # w, b, masks, Down, Up
                layer_refs.append(tuple(refs[idx:idx + 5])); idx += 5
            else:                                    # w, b, masks
                layer_refs.append(tuple(refs[idx:idx + 3]) + (None, None)); idx += 3
        o_ref = refs[idx]; idx += 1
        scratch_refs = []
        for i in range(n_conv):
            scratch_refs.append(tuple(refs[idx:idx + 2])); idx += 2

        x = x_ref[0]                                 # (C0, H*W), lane-dense spatial
        prev = None
        for i in range(n_conv):
            w_ref, b_ref, m_ref, d_ref, u_ref = layer_refs[i]
            pbuf, imbuf = scratch_refs[i]
            cin = metas[i]["cin"]
            ws = metas[i]["ws"]
            s_flat = metas[i]["s"]
            pad = metas[i]["pad"]
            last = metas[i]["last"]

            # 1) bilinear down-resize of the ORIGINAL input (align_corners=True)
            #    as a single MXU matmul against a precomputed kron(Ry,Rx) matrix.
            scaled = x if last else jnp.dot(
                x, d_ref[...], preferred_element_type=jnp.float32)   # (C0, s)

            # 2) zero-haloed flat buffer: the halo supplies the conv zero
            #    padding for row over/under-flow; the channel concat with the
            #    previous layer's upsampled output is fused in here for free.
            pbuf[...] = jnp.zeros(pbuf.shape, pbuf.dtype)
            pbuf[0:c0, pad:pad + s_flat] = scaled
            if i > 0:
                pbuf[c0:cin, pad:pad + s_flat] = prev

            # 3) im2col: 9 statically shifted (masked) views stacked along the
            #    K/sublane axis -> ONE K = 9*Cin matmul instead of 9 tiny ones.
            masks = m_ref[...]                       # (9, s_flat)
            for kh in range(3):
                for kw in range(3):
                    t = kh * 3 + kw
                    off = pad + (kh - 1) * ws + (kw - 1)
                    tap = pbuf[:, off:off + s_flat]              # (cin, s_flat)
                    imbuf[t * cin:(t + 1) * cin, :] = tap * masks[t:t + 1, :]

            # 4) conv = one matmul, + bias, + LeakyReLU(0.2)
            h = jnp.dot(w_ref[...], imbuf[...],
                        preferred_element_type=jnp.float32)      # (cout, s_flat)
            h = h + b_ref[...]
            h = jnp.where(h >= 0.0, h, 0.2 * h)

            if last:
                o_ref[0] = h.astype(o_ref.dtype)
            else:
                # 5) bilinear x2 up-resize, again one MXU matmul.
                prev = jnp.dot(h, u_ref[...],
                               preferred_element_type=jnp.float32)  # (cout, 4*s)

    return kernel


# ----------------------------------------------------------------------------
# Wrapper
# ----------------------------------------------------------------------------
def prepare_params(params):
    """One-time conversion of PyTorch (Cout,Cin,3,3)/(Cout,) params to the
    kernel's (Cout, 9*Cin) / (Cout, 1) layout (K ordered as (kh, kw, ci))."""
    prepped = []
    for w, b in params:
        cout, cin = w.shape[0], w.shape[1]
        w2d = jnp.transpose(w, (0, 2, 3, 1)).reshape(cout, 9 * cin)
        prepped.append((w2d, b.reshape(cout, 1)))
    return prepped


def b2s_conv_forward(x_nchw, prepped_params, *, n_conv):
    """B2SConv forward. x: (N, C, H, W) float32 NCHW; returns NCHW."""
    if n_conv < 2:
        # Faithful to the original module: n_conv == 1 hits an undefined
        # `outdim` in __init__ (NameError), so only n_conv >= 2 is meaningful.
        raise ValueError("B2SConv requires n_conv >= 2 (as in the original).")
    N, c0, H, W = x_nchw.shape
    hw = H * W
    x_flat = x_nchw.reshape(N, c0, hw)               # free reshape, no transpose

    inputs = [x_flat]
    in_specs = [pl.BlockSpec((1, c0, hw), lambda n: (n, 0, 0))]
    scratch_shapes = []
    metas = []
    cout_prev = None
    for i in range(n_conv):
        w2d, b2 = prepped_params[i]
        cout = w2d.shape[0]
        cin = c0 if i == 0 else c0 + cout_prev
        assert w2d.shape[1] == 9 * cin, (w2d.shape, cin)
        last = i == n_conv - 1
        if last:
            hs, ws = H, W
        else:
            sc = 2 ** (n_conv - 1 - i)
            hs, ws = H // sc, W // sc
            assert hs > 0 and ws > 0
        s_flat = hs * ws
        pad = ws + 1

        inputs += [w2d, b2, jnp.asarray(_conv_tap_masks(hs, ws))]
        in_specs += [
            pl.BlockSpec((cout, 9 * cin), lambda n: (0, 0)),
            pl.BlockSpec((cout, 1), lambda n: (0, 0)),
            pl.BlockSpec((9, s_flat), lambda n: (0, 0)),
        ]
        if not last:
            d = jnp.asarray(_resize_matrix_flat((H, W), (hs, ws)))          # (hw, s)
            u = jnp.asarray(_resize_matrix_flat((hs, ws), (2 * hs, 2 * ws)))  # (s, 4s)
            inputs += [d, u]
            in_specs += [
                pl.BlockSpec((hw, s_flat), lambda n: (0, 0)),
                pl.BlockSpec((s_flat, 4 * s_flat), lambda n: (0, 0)),
            ]
        scratch_shapes += [
            pltpu.VMEM((cin, s_flat + 2 * pad), jnp.float32),   # zero-haloed input
            pltpu.VMEM((9 * cin, s_flat), jnp.float32),         # im2col
        ]
        metas.append(dict(cin=cin, cout=cout, hs=hs, ws=ws, s=s_flat,
                          pad=pad, last=last))
        cout_prev = cout

    # Each layer's x2 upsample must land on the next layer's resolution,
    # exactly as the original torch.cat requires.
    for i in range(n_conv - 1):
        assert 2 * metas[i]["hs"] == metas[i + 1]["hs"]
        assert 2 * metas[i]["ws"] == metas[i + 1]["ws"]

    cout_final = metas[-1]["cout"]
    kernel = _build_fused_kernel(n_conv, metas, c0)

    out = pl.pallas_call(
        kernel,
        out_shape=jax.ShapeDtypeStruct((N, cout_final, hw), x_nchw.dtype),
        grid=(N,),
        in_specs=in_specs,
        out_specs=pl.BlockSpec((1, cout_final, hw), lambda n: (n, 0, 0)),
        scratch_shapes=scratch_shapes,
        compiler_params=pltpu.CompilerParams(
            dimension_semantics=("parallel",)),
    )(*inputs)
    return out.reshape(N, cout_final, H, W)


# ----------------------------------------------------------------------------
# Parameter init (PyTorch nn.Conv2d default init, PyTorch weight layout)
# ----------------------------------------------------------------------------
def init_params(key, in_dim, med_dim, out_dim, n_conv):
    del out_dim  # never used by the original module for n_conv >= 2 (its quirk)
    params = []
    outdim = None
    for i in range(n_conv):
        indim = in_dim if i == 0 else in_dim + med_dim
        outdim = outdim if i == n_conv - 1 else med_dim
        key, kw, kb = jax.random.split(key, 3)
        bound = 1.0 / float(np.sqrt(indim * 9))
        w = jax.random.uniform(kw, (outdim, indim, 3, 3), jnp.float32,
                               -bound, bound)
        b = jax.random.uniform(kb, (outdim,), jnp.float32, -bound, bound)
        params.append((w, b))
    return params


# ----------------------------------------------------------------------------
# Pure-JAX reference (mirrors the PyTorch forward) -- used only for self-check
# ----------------------------------------------------------------------------
def _bilinear_ac_nchw(x, out_h, out_w):
    N, C, H, W = x.shape

    def coords(o, i):
        if o == 1:
            return jnp.zeros((1,), jnp.float32)
        return jnp.arange(o, dtype=jnp.float32) * ((i - 1) / (o - 1))

    ys, xs = coords(out_h, H), coords(out_w, W)
    y0 = jnp.floor(ys).astype(jnp.int32); y1 = jnp.minimum(y0 + 1, H - 1)
    x0 = jnp.floor(xs).astype(jnp.int32); x1 = jnp.minimum(x0 + 1, W - 1)
    wy = (ys - y0.astype(jnp.float32))[None, None, :, None]
    wx = (xs - x0.astype(jnp.float32))[None, None, None, :]
    r0, r1 = x[:, :, y0, :], x[:, :, y1, :]
    top = r0[..., x0] * (1.0 - wx) + r0[..., x1] * wx
    bot = r1[..., x0] * (1.0 - wx) + r1[..., x1] * wx
    return top * (1.0 - wy) + bot * wy


def reference_forward(x_nchw, params, *, n_conv):
    N, C, H, W = x_nchw.shape
    out = None
    for i in range(n_conv):
        if i != n_conv - 1:
            scale = 2 ** (n_conv - 1 - i)
            scaled = _bilinear_ac_nchw(x_nchw, H // scale, W // scale)
        else:
            scaled = x_nchw
        inp = scaled if i == 0 else jnp.concatenate([scaled, out], axis=1)
        w, b = params[i]
        conv = jax.lax.conv_general_dilated(
            inp, w, window_strides=(1, 1), padding=((1, 1), (1, 1)),
            dimension_numbers=("NCHW", "OIHW", "NCHW"),
            precision=jax.lax.Precision.HIGHEST)
        conv = conv + b[None, :, None, None]
        out = jnp.where(conv >= 0, conv, 0.2 * conv)
        if i != n_conv - 1:
            out = _bilinear_ac_nchw(out, out.shape[2] * 2, out.shape[3] * 2)
    return out


if __name__ == "__main__":
    in_dim, med_dim, out_dim, n_conv = 4, 8, 6, 2
    N, H, W = 2, 16, 16

    key = jax.random.PRNGKey(0)
    kx, kp = jax.random.split(key)
    x = jax.random.normal(kx, (N, in_dim, H, W), jnp.float32)   # NCHW input
    params = init_params(kp, in_dim, med_dim, out_dim, n_conv)
    prepped = prepare_params(params)        # one-time layout conversion

    fwd = jax.jit(functools.partial(b2s_conv_forward, n_conv=n_conv))
    y = fwd(x, prepped)
    jax.block_until_ready(y)

    # Final layer width is med_dim (faithful to the original module's quirk).
    assert y.shape == (N, med_dim, H, W), y.shape
    assert y.dtype == jnp.float32

    # Self-check against a pure-JAX mirror of the PyTorch forward.
    y_ref = reference_forward(x, params, n_conv=n_conv)
    err = float(jnp.max(jnp.abs(y - y_ref)))
    assert err < 5e-2, f"max abs error vs reference: {err}"

    print("KERNEL_OK")
</pallas_src>

<mosaic_0001>
module attributes {stable_mosaic.version = 11 : i64} {
  func.func @kernel(%arg0: i32, %arg1: memref<1x4x256xf32, #tpu.memory_space<vmem>>, %arg2: memref<8x36xf32, #tpu.memory_space<vmem>>, %arg3: memref<8x1xf32, #tpu.memory_space<vmem>>, %arg4: memref<9x64xf32, #tpu.memory_space<vmem>>, %arg5: memref<256x64xf32, #tpu.memory_space<vmem>>, %arg6: memref<64x256xf32, #tpu.memory_space<vmem>>, %arg7: memref<8x108xf32, #tpu.memory_space<vmem>>, %arg8: memref<8x1xf32, #tpu.memory_space<vmem>>, %arg9: memref<9x256xf32, #tpu.memory_space<vmem>>, %arg10: memref<1x8x256xf32, #tpu.memory_space<vmem>>, %arg11: memref<4x82xf32, #tpu.memory_space<vmem>>, %arg12: memref<36x64xf32, #tpu.memory_space<vmem>>, %arg13: memref<12x290xf32, #tpu.memory_space<vmem>>, %arg14: memref<108x256xf32, #tpu.memory_space<vmem>>) attributes {dimension_semantics = [#tpu.dimension_semantics<parallel>], iteration_bounds = array<i64: 2>, scalar_prefetch = 0 : i64, scratch_operands = 4 : i64, tpu.core_type = #tpu.core_type<tc>, window_params = [{transform_indices = @transform_0, window_bounds = array<i64: 1, 4, 256>}, {pipeline_mode = #tpu.pipeline_mode<synchronous>, transform_indices = @transform_1, window_bounds = array<i64: 8, 36>}, {pipeline_mode = #tpu.pipeline_mode<synchronous>, transform_indices = @transform_2, window_bounds = array<i64: 8, 1>}, {pipeline_mode = #tpu.pipeline_mode<synchronous>, transform_indices = @transform_3, window_bounds = array<i64: 9, 64>}, {pipeline_mode = #tpu.pipeline_mode<synchronous>, transform_indices = @transform_4, window_bounds = array<i64: 256, 64>}, {pipeline_mode = #tpu.pipeline_mode<synchronous>, transform_indices = @transform_5, window_bounds = array<i64: 64, 256>}, {pipeline_mode = #tpu.pipeline_mode<synchronous>, transform_indices = @transform_6, window_bounds = array<i64: 8, 108>}, {pipeline_mode = #tpu.pipeline_mode<synchronous>, transform_indices = @transform_7, window_bounds = array<i64: 8, 1>}, {pipeline_mode = #tpu.pipeline_mode<synchronous>, transform_indices = @transform_8, window_bounds = array<i64: 9, 256>}, {transform_indices = @transform_9, window_bounds = array<i64: 1, 8, 256>}]} {
    %c0 = arith.constant 0 : index
    %c0_0 = arith.constant 0 : index
    %c0_1 = arith.constant 0 : index
    %0 = vector.load %arg1[%c0, %c0_0, %c0_1] : memref<1x4x256xf32, #tpu.memory_space<vmem>>, vector<1x4x256xf32>
    %1 = vector.shape_cast %0 : vector<1x4x256xf32> to vector<4x256xf32>
    %c0_2 = arith.constant 0 : index
    %c0_3 = arith.constant 0 : index
    %2 = vector.load %arg5[%c0_2, %c0_3] : memref<256x64xf32, #tpu.memory_space<vmem>>, vector<256x64xf32>
    %cst = arith.constant dense<0.000000e+00> : vector<4x64xf32>
    %3 = tpu.matmul %1, %2, %cst {dimension_numbers = #tpu.dot_dimension_numbers<[1], [0], [0], [1], [0, 0, 1, 1], [], []>} : vector<4x256xf32>, vector<256x64xf32>, vector<4x64xf32> -> vector<4x64xf32>
    %cst_4 = arith.constant 0.000000e+00 : f32
    %4 = vector.broadcast %cst_4 : f32 to vector<4x82xf32>
    %c0_5 = arith.constant 0 : index
    %c0_6 = arith.constant 0 : index
    %5 = vector.load %arg11[%c0_5, %c0_6] : memref<4x82xf32, #tpu.memory_space<vmem>>, vector<4x82xf32>
    tpu.vector_store %arg11[%c0_5, %c0_6], %4 {strides = array<i32>} : memref<4x82xf32, #tpu.memory_space<vmem>>, vector<4x82xf32>,
    %c0_7 = arith.constant 0 : index
    %c9 = arith.constant 9 : index
    %6 = vector.load %arg11[%c0_7, %c9] : memref<4x82xf32, #tpu.memory_space<vmem>>, vector<4x64xf32>
    tpu.vector_store %arg11[%c0_7, %c9], %3 {strides = array<i32>} : memref<4x82xf32, #tpu.memory_space<vmem>>, vector<4x64xf32>,
    %c0_8 = arith.constant 0 : index
    %c0_9 = arith.constant 0 : index
    %7 = vector.load %arg4[%c0_8, %c0_9] : memref<9x64xf32, #tpu.memory_space<vmem>>, vector<9x64xf32>
    %c0_10 = arith.constant 0 : index
    %c0_11 = arith.constant 0 : index
    %8 = vector.load %arg11[%c0_10, %c0_11] : memref<4x82xf32, #tpu.memory_space<vmem>>, vector<4x64xf32>
    %9 = vector.extract_strided_slice %7 {offsets = [0, 0], sizes = [1, 64], strides = [1, 1]} : vector<9x64xf32> to vector<1x64xf32>
    %10 = vector.broadcast %9 : vector<1x64xf32> to vector<4x64xf32>
    %11 = arith.mulf %8, %10 : vector<4x64xf32>
    %c0_12 = arith.constant 0 : index
    %c0_13 = arith.constant 0 : index
    %12 = vector.load %arg12[%c0_12, %c0_13] : memref<36x64xf32, #tpu.memory_space<vmem>>, vector<4x64xf32>
    tpu.vector_store %arg12[%c0_12, %c0_13], %11 {strides = array<i32>} : memref<36x64xf32, #tpu.memory_space<vmem>>, vector<4x64xf32>,
    %c0_14 = arith.constant 0 : index
    %c1 = arith.constant 1 : index
    %13 = vector.load %arg11[%c0_14, %c1] : memref<4x82xf32, #tpu.memory_space<vmem>>, vector<4x64xf32>
    %14 = vector.extract_strided_slice %7 {offsets = [1, 0], sizes = [1, 64], strides = [1, 1]} : vector<9x64xf32> to vector<1x64xf32>
    %15 = vector.broadcast %14 : vector<1x64xf32> to vector<4x64xf32>
    %16 = arith.mulf %13, %15 : vector<4x64xf32>
    %c4 = arith.constant 4 : index
    %c0_15 = arith.constant 0 : index
    %17 = vector.load %arg12[%c4, %c0_15] : memref<36x64xf32, #tpu.memory_space<vmem>>, vector<4x64xf32>
    tpu.vector_store %arg12[%c4, %c0_15], %16 {strides = array<i32>} : memref<36x64xf32, #tpu.memory_space<vmem>>, vector<4x64xf32>,
    %c0_16 = arith.constant 0 : index
    %c2 = arith.constant 2 : index
    %18 = vector.load %arg11[%c0_16, %c2] : memref<4x82xf32, #tpu.memory_space<vmem>>, vector<4x64xf32>
    %19 = vector.extract_strided_slice %7 {offsets = [2, 0], sizes = [1, 64], strides = [1, 1]} : vector<9x64xf32> to vector<1x64xf32>
    %20 = vector.broadcast %19 : vector<1x64xf32> to vector<4x64xf32>
    %21 = arith.mulf %18, %20 : vector<4x64xf32>
    %c8 = arith.constant 8 : index
    %c0_17 = arith.constant 0 : index
    %22 = vector.load %arg12[%c8, %c0_17] : memref<36x64xf32, #tpu.memory_space<vmem>>, vector<4x64xf32>
    tpu.vector_store %arg12[%c8, %c0_17], %21 {strides = array<i32>} : memref<36x64xf32, #tpu.memory_space<vmem>>, vector<4x64xf32>,
    %c0_18 = arith.constant 0 : index
    %c8_19 = arith.constant 8 : index
    %23 = vector.load %arg11[%c0_18, %c8_19] : memref<4x82xf32, #tpu.memory_space<vmem>>, vector<4x64xf32>
    %24 = vector.extract_strided_slice %7 {offsets = [3, 0], sizes = [1, 64], strides = [1, 1]} : vector<9x64xf32> to vector<1x64xf32>
    %25 = vector.broadcast %24 : vector<1x64xf32> to vector<4x64xf32>
    %26 = arith.mulf %23, %25 : vector<4x64xf32>
    %c12 = arith.constant 12 : index
    %c0_20 = arith.constant 0 : index
    %27 = vector.load %arg12[%c12, %c0_20] : memref<36x64xf32, #tpu.memory_space<vmem>>, vector<4x64xf32>
    tpu.vector_store %arg12[%c12, %c0_20], %26 {strides = array<i32>} : memref<36x64xf32, #tpu.memory_space<vmem>>, vector<4x64xf32>,
    %c0_21 = arith.constant 0 : index
    %c9_22 = arith.constant 9 : index
    %28 = vector.load %arg11[%c0_21, %c9_22] : memref<4x82xf32, #tpu.memory_space<vmem>>, vector<4x64xf32>
    %29 = vector.extract_strided_slice %7 {offsets = [4, 0], sizes = [1, 64], strides = [1, 1]} : vector<9x64xf32> to vector<1x64xf32>
    %30 = vector.broadcast %29 : vector<1x64xf32> to vector<4x64xf32>
    %31 = arith.mulf %28, %30 : vector<4x64xf32>
    %c16 = arith.constant 16 : index
    %c0_23 = arith.constant 0 : index
    %32 = vector.load %arg12[%c16, %c0_23] : memref<36x64xf32, #tpu.memory_space<vmem>>, vector<4x64xf32>
    tpu.vector_store %arg12[%c16, %c0_23], %31 {strides = array<i32>} : memref<36x64xf32, #tpu.memory_space<vmem>>, vector<4x64xf32>,
    %c0_24 = arith.constant 0 : index
    %c10 = arith.constant 10 : index
    %33 = vector.load %arg11[%c0_24, %c10] : memref<4x82xf32, #tpu.memory_space<vmem>>, vector<4x64xf32>
    %34 = vector.extract_strided_slice %7 {offsets = [5, 0], sizes = [1, 64], strides = [1, 1]} : vector<9x64xf32> to vector<1x64xf32>
    %35 = vector.broadcast %34 : vector<1x64xf32> to vector<4x64xf32>
    %36 = arith.mulf %33, %35 : vector<4x64xf32>
    %c20 = arith.constant 20 : index
    %c0_25 = arith.constant 0 : index
    %37 = vector.load %arg12[%c20, %c0_25] : memref<36x64xf32, #tpu.memory_space<vmem>>, vector<4x64xf32>
    tpu.vector_store %arg12[%c20, %c0_25], %36 {strides = array<i32>} : memref<36x64xf32, #tpu.memory_space<vmem>>, vector<4x64xf32>,
    %c0_26 = arith.constant 0 : index
    %c16_27 = arith.constant 16 : index
    %38 = vector.load %arg11[%c0_26, %c16_27] : memref<4x82xf32, #tpu.memory_space<vmem>>, vector<4x64xf32>
    %39 = vector.extract_strided_slice %7 {offsets = [6, 0], sizes = [1, 64], strides = [1, 1]} : vector<9x64xf32> to vector<1x64xf32>
    %40 = vector.broadcast %39 : vector<1x64xf32> to vector<4x64xf32>
    %41 = arith.mulf %38, %40 : vector<4x64xf32>
    %c24 = arith.constant 24 : index
    %c0_28 = arith.constant 0 : index
    %42 = vector.load %arg12[%c24, %c0_28] : memref<36x64xf32, #tpu.memory_space<vmem>>, vector<4x64xf32>
    tpu.vector_store %arg12[%c24, %c0_28], %41 {strides = array<i32>} : memref<36x64xf32, #tpu.memory_space<vmem>>, vector<4x64xf32>,
    %c0_29 = arith.constant 0 : index
    %c17 = arith.constant 17 : index
    %43 = vector.load %arg11[%c0_29, %c17] : memref<4x82xf32, #tpu.memory_space<vmem>>, vector<4x64xf32>
    %44 = vector.extract_strided_slice %7 {offsets = [7, 0], sizes = [1, 64], strides = [1, 1]} : vector<9x64xf32> to vector<1x64xf32>
    %45 = vector.broadcast %44 : vector<1x64xf32> to vector<4x64xf32>
    %46 = arith.mulf %43, %45 : vector<4x64xf32>
    %c28 = arith.constant 28 : index
    %c0_30 = arith.constant 0 : index
    %47 = vector.load %arg12[%c28, %c0_30] : memref<36x64xf32, #tpu.memory_space<vmem>>, vector<4x64xf32>
    tpu.vector_store %arg12[%c28, %c0_30], %46 {strides = array<i32>} : memref<36x64xf32, #tpu.memory_space<vmem>>, vector<4x64xf32>,
    %c0_31 = arith.constant 0 : index
    %c18 = arith.constant 18 : index
    %48 = vector.load %arg11[%c0_31, %c18] : memref<4x82xf32, #tpu.memory_space<vmem>>, vector<4x64xf32>
    %49 = vector.extract_strided_slice %7 {offsets = [8, 0], sizes = [1, 64], strides = [1, 1]} : vector<9x64xf32> to vector<1x64xf32>
    %50 = vector.broadcast %49 : vector<1x64xf32> to vector<4x64xf32>
    %51 = arith.mulf %48, %50 : vector<4x64xf32>
    %c32 = arith.constant 32 : index
    %c0_32 = arith.constant 0 : index
    %52 = vector.load %arg12[%c32, %c0_32] : memref<36x64xf32, #tpu.memory_space<vmem>>, vector<4x64xf32>
    tpu.vector_store %arg12[%c32, %c0_32], %51 {strides = array<i32>} : memref<36x64xf32, #tpu.memory_space<vmem>>, vector<4x64xf32>,
    %c0_33 = arith.constant 0 : index
    %c0_34 = arith.constant 0 : index
    %53 = vector.load %arg2[%c0_33, %c0_34] : memref<8x36xf32, #tpu.memory_space<vmem>>, vector<8x36xf32>
    %c0_35 = arith.constant 0 : index
    %c0_36 = arith.constant 0 : index
    %54 = vector.load %arg12[%c0_35, %c0_36] : memref<36x64xf32, #tpu.memory_space<vmem>>, vector<36x64xf32>
    %cst_37 = arith.constant dense<0.000000e+00> : vector<8x64xf32>
    %55 = tpu.matmul %53, %54, %cst_37 {dimension_numbers = #tpu.dot_dimension_numbers<[1], [0], [0], [1], [0, 0, 1, 1], [], []>} : vector<8x36xf32>, vector<36x64xf32>, vector<8x64xf32> -> vector<8x64xf32>
    %c0_38 = arith.constant 0 : index
    %c0_39 = arith.constant 0 : index
    %56 = vector.load %arg3[%c0_38, %c0_39] : memref<8x1xf32, #tpu.memory_space<vmem>>, vector<8x1xf32>
    %57 = vector.broadcast %56 : vector<8x1xf32> to vector<8x64xf32>
    %58 = arith.addf %55, %57 : vector<8x64xf32>
    %cst_40 = arith.constant 0.000000e+00 : f32
    %59 = vector.broadcast %cst_40 : f32 to vector<8x64xf32>
    %60 = arith.cmpf oge, %58, %59 : vector<8x64xf32>
    %cst_41 = arith.constant 2.000000e-01 : f32
    %61 = vector.broadcast %cst_41 : f32 to vector<8x64xf32>
    %62 = arith.mulf %61, %58 : vector<8x64xf32>
    %63 = arith.select %60, %58, %62 : vector<8x64xi1>, vector<8x64xf32>
    %c0_42 = arith.constant 0 : index
    %c0_43 = arith.constant 0 : index
    %64 = vector.load %arg6[%c0_42, %c0_43] : memref<64x256xf32, #tpu.memory_space<vmem>>, vector<64x256xf32>
    %cst_44 = arith.constant dense<0.000000e+00> : vector<8x256xf32>
    %65 = tpu.matmul %63, %64, %cst_44 {dimension_numbers = #tpu.dot_dimension_numbers<[1], [0], [0], [1], [0, 0, 1, 1], [], []>} : vector<8x64xf32>, vector<64x256xf32>, vector<8x256xf32> -> vector<8x256xf32>
    %cst_45 = arith.constant 0.000000e+00 : f32
    %66 = vector.broadcast %cst_45 : f32 to vector<12x290xf32>
    %c0_46 = arith.constant 0 : index
    %c0_47 = arith.constant 0 : index
    %67 = vector.load %arg13[%c0_46, %c0_47] : memref<12x290xf32, #tpu.memory_space<vmem>>, vector<12x290xf32>
    tpu.vector_store %arg13[%c0_46, %c0_47], %66 {strides = array<i32>} : memref<12x290xf32, #tpu.memory_space<vmem>>, vector<12x290xf32>,
    %c0_48 = arith.constant 0 : index
    %c17_49 = arith.constant 17 : index
    %68 = vector.load %arg13[%c0_48, %c17_49] : memref<12x290xf32, #tpu.memory_space<vmem>>, vector<4x256xf32>
    tpu.vector_store %arg13[%c0_48, %c17_49], %1 {strides = array<i32>} : memref<12x290xf32, #tpu.memory_space<vmem>>, vector<4x256xf32>,
    %c4_50 = arith.constant 4 : index
    %c17_51 = arith.constant 17 : index
    %69 = vector.load %arg13[%c4_50, %c17_51] : memref<12x290xf32, #tpu.memory_space<vmem>>, vector<8x256xf32>
    tpu.vector_store %arg13[%c4_50, %c17_51], %65 {strides = array<i32>} : memref<12x290xf32, #tpu.memory_space<vmem>>, vector<8x256xf32>,
    %c0_52 = arith.constant 0 : index
    %c0_53 = arith.constant 0 : index
    %70 = vector.load %arg9[%c0_52, %c0_53] : memref<9x256xf32, #tpu.memory_space<vmem>>, vector<9x256xf32>
    %c0_54 = arith.constant 0 : index
    %c0_55 = arith.constant 0 : index
    %71 = vector.load %arg13[%c0_54, %c0_55] : memref<12x290xf32, #tpu.memory_space<vmem>>, vector<12x256xf32>
    %72 = vector.extract_strided_slice %70 {offsets = [0, 0], sizes = [1, 256], strides = [1, 1]} : vector<9x256xf32> to vector<1x256xf32>
    %73 = vector.broadcast %72 : vector<1x256xf32> to vector<12x256xf32>
    %74 = arith.mulf %71, %73 : vector<12x256xf32>
    %c0_56 = arith.constant 0 : index
    %c0_57 = arith.constant 0 : index
    %75 = vector.load %arg14[%c0_56, %c0_57] : memref<108x256xf32, #tpu.memory_space<vmem>>, vector<12x256xf32>
    tpu.vector_store %arg14[%c0_56, %c0_57], %74 {strides = array<i32>} : memref<108x256xf32, #tpu.memory_space<vmem>>, vector<12x256xf32>,
    %c0_58 = arith.constant 0 : index
    %c1_59 = arith.constant 1 : index
    %76 = vector.load %arg13[%c0_58, %c1_59] : memref<12x290xf32, #tpu.memory_space<vmem>>, vector<12x256xf32>
    %77 = vector.extract_strided_slice %70 {offsets = [1, 0], sizes = [1, 256], strides = [1, 1]} : vector<9x256xf32> to vector<1x256xf32>
    %78 = vector.broadcast %77 : vector<1x256xf32> to vector<12x256xf32>
    %79 = arith.mulf %76, %78 : vector<12x256xf32>
    %c12_60 = arith.constant 12 : index
    %c0_61 = arith.constant 0 : index
    %80 = vector.load %arg14[%c12_60, %c0_61] : memref<108x256xf32, #tpu.memory_space<vmem>>, vector<12x256xf32>
    tpu.vector_store %arg14[%c12_60, %c0_61], %79 {strides = array<i32>} : memref<108x256xf32, #tpu.memory_space<vmem>>, vector<12x256xf32>,
    %c0_62 = arith.constant 0 : index
    %c2_63 = arith.constant 2 : index
    %81 = vector.load %arg13[%c0_62, %c2_63] : memref<12x290xf32, #tpu.memory_space<vmem>>, vector<12x256xf32>
    %82 = vector.extract_strided_slice %70 {offsets = [2, 0], sizes = [1, 256], strides = [1, 1]} : vector<9x256xf32> to vector<1x256xf32>
    %83 = vector.broadcast %82 : vector<1x256xf32> to vector<12x256xf32>
    %84 = arith.mulf %81, %83 : vector<12x256xf32>
    %c24_64 = arith.constant 24 : index
    %c0_65 = arith.constant 0 : index
    %85 = vector.load %arg14[%c24_64, %c0_65] : memref<108x256xf32, #tpu.memory_space<vmem>>, vector<12x256xf32>
    tpu.vector_store %arg14[%c24_64, %c0_65], %84 {strides = array<i32>} : memref<108x256xf32, #tpu.memory_space<vmem>>, vector<12x256xf32>,
    %c0_66 = arith.constant 0 : index
    %c16_67 = arith.constant 16 : index
    %86 = vector.load %arg13[%c0_66, %c16_67] : memref<12x290xf32, #tpu.memory_space<vmem>>, vector<12x256xf32>
    %87 = vector.extract_strided_slice %70 {offsets = [3, 0], sizes = [1, 256], strides = [1, 1]} : vector<9x256xf32> to vector<1x256xf32>
    %88 = vector.broadcast %87 : vector<1x256xf32> to vector<12x256xf32>
    %89 = arith.mulf %86, %88 : vector<12x256xf32>
    %c36 = arith.constant 36 : index
    %c0_68 = arith.constant 0 : index
    %90 = vector.load %arg14[%c36, %c0_68] : memref<108x256xf32, #tpu.memory_space<vmem>>, vector<12x256xf32>
    tpu.vector_store %arg14[%c36, %c0_68], %89 {strides = array<i32>} : memref<108x256xf32, #tpu.memory_space<vmem>>, vector<12x256xf32>,
    %c0_69 = arith.constant 0 : index
    %c17_70 = arith.constant 17 : index
    %91 = vector.load %arg13[%c0_69, %c17_70] : memref<12x290xf32, #tpu.memory_space<vmem>>, vector<12x256xf32>
    %92 = vector.extract_strided_slice %70 {offsets = [4, 0], sizes = [1, 256], strides = [1, 1]} : vector<9x256xf32> to vector<1x256xf32>
    %93 = vector.broadcast %92 : vector<1x256xf32> to vector<12x256xf32>
    %94 = arith.mulf %91, %93 : vector<12x256xf32>
    %c48 = arith.constant 48 : index
    %c0_71 = arith.constant 0 : index
    %95 = vector.load %arg14[%c48, %c0_71] : memref<108x256xf32, #tpu.memory_space<vmem>>, vector<12x256xf32>
    tpu.vector_store %arg14[%c48, %c0_71], %94 {strides = array<i32>} : memref<108x256xf32, #tpu.memory_space<vmem>>, vector<12x256xf32>,
    %c0_72 = arith.constant 0 : index
    %c18_73 = arith.constant 18 : index
    %96 = vector.load %arg13[%c0_72, %c18_73] : memref<12x290xf32, #tpu.memory_space<vmem>>, vector<12x256xf32>
    %97 = vector.extract_strided_slice %70 {offsets = [5, 0], sizes = [1, 256], strides = [1, 1]} : vector<9x256xf32> to vector<1x256xf32>
    %98 = vector.broadcast %97 : vector<1x256xf32> to vector<12x256xf32>
    %99 = arith.mulf %96, %98 : vector<12x256xf32>
    %c60 = arith.constant 60 : index
    %c0_74 = arith.constant 0 : index
    %100 = vector.load %arg14[%c60, %c0_74] : memref<108x256xf32, #tpu.memory_space<vmem>>, vector<12x256xf32>
    tpu.vector_store %arg14[%c60, %c0_74], %99 {strides = array<i32>} : memref<108x256xf32, #tpu.memory_space<vmem>>, vector<12x256xf32>,
    %c0_75 = arith.constant 0 : index
    %c32_76 = arith.constant 32 : index
    %101 = vector.load %arg13[%c0_75, %c32_76] : memref<12x290xf32, #tpu.memory_space<vmem>>, vector<12x256xf32>
    %102 = vector.extract_strided_slice %70 {offsets = [6, 0], sizes = [1, 256], strides = [1, 1]} : vector<9x256xf32> to vector<1x256xf32>
    %103 = vector.broadcast %102 : vector<1x256xf32> to vector<12x256xf32>
    %104 = arith.mulf %101, %103 : vector<12x256xf32>
    %c72 = arith.constant 72 : index
    %c0_77 = arith.constant 0 : index
    %105 = vector.load %arg14[%c72, %c0_77] : memref<108x256xf32, #tpu.memory_space<vmem>>, vector<12x256xf32>
    tpu.vector_store %arg14[%c72, %c0_77], %104 {strides = array<i32>} : memref<108x256xf32, #tpu.memory_space<vmem>>, vector<12x256xf32>,
    %c0_78 = arith.constant 0 : index
    %c33 = arith.constant 33 : index
    %106 = vector.load %arg13[%c0_78, %c33] : memref<12x290xf32, #tpu.memory_space<vmem>>, vector<12x256xf32>
    %107 = vector.extract_strided_slice %70 {offsets = [7, 0], sizes = [1, 256], strides = [1, 1]} : vector<9x256xf32> to vector<1x256xf32>
    %108 = vector.broadcast %107 : vector<1x256xf32> to vector<12x256xf32>
    %109 = arith.mulf %106, %108 : vector<12x256xf32>
    %c84 = arith.constant 84 : index
    %c0_79 = arith.constant 0 : index
    %110 = vector.load %arg14[%c84, %c0_79] : memref<108x256xf32, #tpu.memory_space<vmem>>, vector<12x256xf32>
    tpu.vector_store %arg14[%c84, %c0_79], %109 {strides = array<i32>} : memref<108x256xf32, #tpu.memory_space<vmem>>, vector<12x256xf32>,
    %c0_80 = arith.constant 0 : index
    %c34 = arith.constant 34 : index
    %111 = vector.load %arg13[%c0_80, %c34] : memref<12x290xf32, #tpu.memory_space<vmem>>, vector<12x256xf32>
    %112 = vector.extract_strided_slice %70 {offsets = [8, 0], sizes = [1, 256], strides = [1, 1]} : vector<9x256xf32> to vector<1x256xf32>
    %113 = vector.broadcast %112 : vector<1x256xf32> to vector<12x256xf32>
    %114 = arith.mulf %111, %113 : vector<12x256xf32>
    %c96 = arith.constant 96 : index
    %c0_81 = arith.constant 0 : index
    %115 = vector.load %arg14[%c96, %c0_81] : memref<108x256xf32, #tpu.memory_space<vmem>>, vector<12x256xf32>
    tpu.vector_store %arg14[%c96, %c0_81], %114 {strides = array<i32>} : memref<108x256xf32, #tpu.memory_space<vmem>>, vector<12x256xf32>,
    %c0_82 = arith.constant 0 : index
    %c0_83 = arith.constant 0 : index
    %116 = vector.load %arg7[%c0_82, %c0_83] : memref<8x108xf32, #tpu.memory_space<vmem>>, vector<8x108xf32>
    %c0_84 = arith.constant 0 : index
    %c0_85 = arith.constant 0 : index
    %117 = vector.load %arg14[%c0_84, %c0_85] : memref<108x256xf32, #tpu.memory_space<vmem>>, vector<108x256xf32>
    %cst_86 = arith.constant dense<0.000000e+00> : vector<8x256xf32>
    %118 = tpu.matmul %116, %117, %cst_86 {dimension_numbers = #tpu.dot_dimension_numbers<[1], [0], [0], [1], [0, 0, 1, 1], [], []>} : vector<8x108xf32>, vector<108x256xf32>, vector<8x256xf32> -> vector<8x256xf32>
    %c0_87 = arith.constant 0 : index
    %c0_88 = arith.constant 0 : index
    %119 = vector.load %arg8[%c0_87, %c0_88] : memref<8x1xf32, #tpu.memory_space<vmem>>, vector<8x1xf32>
    %120 = vector.broadcast %119 : vector<8x1xf32> to vector<8x256xf32>
    %121 = arith.addf %118, %120 : vector<8x256xf32>
    %cst_89 = arith.constant 0.000000e+00 : f32
    %122 = vector.broadcast %cst_89 : f32 to vector<8x256xf32>
    %123 = arith.cmpf oge, %121, %122 : vector<8x256xf32>
    %cst_90 = arith.constant 2.000000e-01 : f32
    %124 = vector.broadcast %cst_90 : f32 to vector<8x256xf32>
    %125 = arith.mulf %124, %121 : vector<8x256xf32>
    %126 = arith.select %123, %121, %125 : vector<8x256xi1>, vector<8x256xf32>
    %c0_91 = arith.constant 0 : index
    %c0_92 = arith.constant 0 : index
    %c0_93 = arith.constant 0 : index
    %127 = vector.load %arg10[%c0_91, %c0_92, %c0_93] : memref<1x8x256xf32, #tpu.memory_space<vmem>>, vector<1x8x256xf32>
    %128 = vector.shape_cast %127 : vector<1x8x256xf32> to vector<8x256xf32>
    %129 = vector.shape_cast %126 : vector<8x256xf32> to vector<1x8x256xf32>
    tpu.vector_store %arg10[%c0_91, %c0_92, %c0_93], %129 {strides = array<i32>} : memref<1x8x256xf32, #tpu.memory_space<vmem>>, vector<1x8x256xf32>,
    return
  }
  func.func @transform_0(%arg0: i32) -> (i32, i32, i32) {
    %c0_i32 = arith.constant 0 : i32
    %c0_i32_0 = arith.constant 0 : i32
    %c0_i32_1 = arith.constant 0 : i32
    return %arg0, %c0_i32, %c0_i32_0 : i32, i32, i32
  }
  func.func @transform_1(%arg0: i32) -> (i32, i32) {
    %c0_i32 = arith.constant 0 : i32
    %c0_i32_0 = arith.constant 0 : i32
    %c0_i32_1 = arith.constant 0 : i32
    return %c0_i32, %c0_i32_0 : i32, i32
  }
  func.func @transform_2(%arg0: i32) -> (i32, i32) {
    %c0_i32 = arith.constant 0 : i32
    %c0_i32_0 = arith.constant 0 : i32
    %c0_i32_1 = arith.constant 0 : i32
    return %c0_i32, %c0_i32_0 : i32, i32
  }
  func.func @transform_3(%arg0: i32) -> (i32, i32) {
    %c0_i32 = arith.constant 0 : i32
    %c0_i32_0 = arith.constant 0 : i32
    %c0_i32_1 = arith.constant 0 : i32
    return %c0_i32, %c0_i32_0 : i32, i32
  }
  func.func @transform_4(%arg0: i32) -> (i32, i32) {
    %c0_i32 = arith.constant 0 : i32
    %c0_i32_0 = arith.constant 0 : i32
    %c0_i32_1 = arith.constant 0 : i32
    return %c0_i32, %c0_i32_0 : i32, i32
  }
  func.func @transform_5(%arg0: i32) -> (i32, i32) {
    %c0_i32 = arith.constant 0 : i32
    %c0_i32_0 = arith.constant 0 : i32
    %c0_i32_1 = arith.constant 0 : i32
    return %c0_i32, %c0_i32_0 : i32, i32
  }
  func.func @transform_6(%arg0: i32) -> (i32, i32) {
    %c0_i32 = arith.constant 0 : i32
    %c0_i32_0 = arith.constant 0 : i32
    %c0_i32_1 = arith.constant 0 : i32
    return %c0_i32, %c0_i32_0 : i32, i32
  }
  func.func @transform_7(%arg0: i32) -> (i32, i32) {
    %c0_i32 = arith.constant 0 : i32
    %c0_i32_0 = arith.constant 0 : i32
    %c0_i32_1 = arith.constant 0 : i32
    return %c0_i32, %c0_i32_0 : i32, i32
  }
  func.func @transform_8(%arg0: i32) -> (i32, i32) {
    %c0_i32 = arith.constant 0 : i32
    %c0_i32_0 = arith.constant 0 : i32
    %c0_i32_1 = arith.constant 0 : i32
    return %c0_i32, %c0_i32_0 : i32, i32
  }
  func.func @transform_9(%arg0: i32) -> (i32, i32, i32) {
    %c0_i32 = arith.constant 0 : i32
    %c0_i32_0 = arith.constant 0 : i32
    %c0_i32_1 = arith.constant 0 : i32
    return %arg0, %c0_i32, %c0_i32_0 : i32, i32, i32
  }
}

</mosaic_0001>

<bundles_post_ra>
// kernel: b2s_conv_forward.1
= control target key start
LH: loop header
LB: loop body
LE: loop exit
PB: predicated region body
PF: predicated region fallthrough
CT: control target
= control target key end

     0   :  { %14 = vsyncpa [#allocation7], 0  ;;  %s2517_s0 = inlined_call_operand.vmem [shape: f32[2,4,256], index: 0, kind: input, shape index: {}]   ;;  %s2518_s1 = inlined_call_operand.vmem [shape: f32[8,36], index: 1, kind: input, shape index: {}]   ;;  %s2519_s2 = inlined_call_operand.vmem [shape: f32[8,1], index: 2, kind: input, shape index: {}]   ;;  %s2520_s3 = inlined_call_operand.vmem [shape: f32[9,64], index: 3, kind: input, shape index: {}]   ;;  %s2521_s4 = inlined_call_operand.hbm [shape: f32[256,64], index: 4, kind: input, shape index: {}]   ;;  %s2522_s5 = inlined_call_operand.vmem [shape: f32[64,256], index: 5, kind: input, shape index: {}]   ;;  %s2523_s6 = inlined_call_operand.hbm [shape: f32[8,108], index: 6, kind: input, shape index: {}]   ;;  %s2524_s7 = inlined_call_operand.vmem [shape: f32[8,1], index: 7, kind: input, shape index: {}]   ;;  %s2525_s8 = inlined_call_operand.vmem [shape: f32[9,256], index: 8, kind: input, shape index: {}]   ;;  %s2526_s9 = inlined_call_operand.vmem [shape: f32[2,8,256], index: 9, kind: output, shape index: {}]  }
   0x1   :  { %15 = vsyncpa [#allocation9], 0  ;;  %s1964_s30 = smov 0  }
   0x2 LB: > { %s1970_s10 = sadd.s32 4294967295, %s1881_s30   ;;  %p1588_p0 = scmp.ge.s32.totalorder %s1881_s30, 1  ;;  %s1881_s30 = sphi %s1964_s30, %s21_s30  }
   0x3   : > { %p246_p1 = scmp.lt.s32.totalorder %s1881_s30, 3  ;;  %s1883_s11 = smov [#allocation6]  }
   0x4   : > { %s267_s12 = sshll.u32 %s1883_s11, 4  ;;  %p2527_p3 = scmp.eq.s32.totalorder %s1970_s10, 0  ;;  %s268_s12 = int_to_ptr.vmem [resolvable:$true] %s267_s12 }
   0x5   : > { %p1974_p2 = pnand %p1588_p0, %p246_p1  ;;  %s1884_s14 = smov [#allocation8]  }
   0x6   : > { %s284_s15 = sshll.u32 %s1884_s14, 4  ;;  %s1811_s19 = scalar_lea.hbm %s2521_s4, 4096  ;;  %s1987_s15 = int_to_ptr.vmem [resolvable:$true] %s284_s15 }
   0x7   : > { %s2531_s13 = scalar_select %p1974_p2, 1, 0 }
   0x8   : > { %p1758_p4 = pneg %p1974_p2  ;;  %p1812_p6 = scmp.ne.s32.totalorder %s2521_s4, %s1811_s19 }
   0x9   : > { %p1818_p10 = scmp.lt.u32.totalorder %s1811_s19, %s2521_s4 }
   0xa   : > { %p1983_p5 = pnand %p2527_p3, %p1758_p4 }
   0xc   : > { %p1813_p7 = pneg %p1983_p5 }
   0xe   : > { %p1814_p8 = pnand %p1813_p7, %p1812_p6 }
  0x10   : > { %p1815_p9 = pneg %p1814_p8 }
  0x12   : > { %p1820_p11 = pnand %p1818_p10, %p1815_p9 }
  0x14   : > { %1823 = shalt.err (!%p1820_p11)
}
  0x15   : > { %s1824_s24 = scalar_lea.vmem %s268_s12, 4096  ;;  %p1832_p1 = scmp.lt.s32.totalorder %s268_s12, %s268_s12 }
  0x16   : > { %p1825_p12 = scmp.ne.s32.totalorder %s268_s12, %s1824_s24  ;;  %p1833_p4 = scmp.lt.s32.totalorder %s1824_s24, %s1824_s24 }
  0x18   : > { %p1827_p13 = pnand %p1825_p12, %p1813_p7  ;;  %p1834_p3 = por %p1833_p4, %p1832_p1 }
  0x1a   : > { %p1828_p0 = pneg %p1827_p13 }
  0x1c   : > { %p1835_p2 = pnand %p1834_p3, %p1828_p0 }
  0x1e   : > { %1838 = shalt.err (!%p1835_p2)
}
  0x1f   : > { %s1885_s25 = smov 128   ;;  %s1886_s26 = smov 8  }
  0x20   : > { %1761 = dma.hbm_to_vmem [thread:$0]  (!%p1983_p5), %s2521_s4, 4096, %s268_s12, [#allocation7], %s1885_s25, %s1885_s25, %s1886_s26  }
  0x21   : > { %s1839_s14 = scalar_lea.hbm %s2523_s6, 128 }
  0x22   : > { %p1840_p6 = scmp.ne.s32.totalorder %s2523_s6, %s1839_s14  ;;  %p1846_p8 = scmp.lt.u32.totalorder %s1839_s14, %s2523_s6 }
  0x24   : > { %p1842_p2 = pnand %p1840_p6, %p1813_p7 }
  0x26   : > { %p1843_p3 = pneg %p1842_p2 }
  0x28   : > { %p1848_p9 = pnand %p1846_p8, %p1843_p3 }
  0x2a   : > { %1851 = shalt.err (!%p1848_p9)
}
  0x2b   : > { %s1852_s12 = scalar_lea.vmem %s1987_s15, 128  ;;  %p1860_p13 = scmp.lt.s32.totalorder %s1987_s15, %s1987_s15 }
  0x2c   : > { %p1853_p10 = scmp.ne.s32.totalorder %s1987_s15, %s1852_s12  ;;  %p1861_p0 = scmp.lt.s32.totalorder %s1852_s12, %s1852_s12 }
  0x2e   : > { %p1855_p11 = pnand %p1853_p10, %p1813_p7  ;;  %p1862_p1 = por %p1861_p0, %p1860_p13 }
  0x30   : > { %p1856_p12 = pneg %p1855_p11 }
  0x32   : > { %p1863_p4 = pnand %p1862_p1, %p1856_p12 }
  0x34   : > { %1866 = shalt.err (!%p1863_p4)
}
  0x35   : > { %1764 = dma.hbm_to_vmem [thread:$0]  (!%p1983_p5), %s2523_s6, 128, %s1987_s15, [#allocation9]  }
  0x36   : > { %p2533_p6 = scmp.ne.s32.totalorder %s2531_s13, 0 }
  0x37   : > { %p2534_p2 = scmp.eq.s32.totalorder (!%p2533_p6), %s1970_s10, 0 }
  0x38   : > { %311 = sbr.rel (%p2533_p6) target bundleno = 1583 (0x62f), region = 56 }
  0x3f   : > { %1872 = dma.done.wait (%p2534_p2), [#allocation7], 4096   ;;  %p2535_p7 = pmov %p2534_p2 }
  0x40   : > { %p2536_p3 = pmov %p2534_p2 }
  0x41   : > { %1874 = vsyncadd (%p2535_p7), [#allocation7], 4294963200 }
  0x42   : > { %1876 = dma.done.wait (%p2536_p3), [#allocation9], 128   ;;  %p2537_p8 = pmov %p2534_p2 }
  0x43   : > { %p351_p9 = scmp.lt.s32.totalorder %s1970_s10, 1  ;;  %v378_v0 = vld [vmem:[#allocation6 + $0x80] sm:$0xff]  ;;  %v379_v1 = vld [vmem:[#allocation6 + $0x88] sm:$0xff]  ;;  %v478_v3 = vlaneseq  ;;  %v380_v6 = vld [vmem:[#allocation6 + $0x90] sm:$0xff]  ;;  %s1887_s26 = smov 2   ;;  %vm467_vm0 = vcmask 666624  }
  0x44   : > { %1878 = vsyncadd (%p2537_p8), [#allocation9], 4294967168  ;;  %v362_v2 = vld [vmem:[#allocation6] sm:$0xff]  ;;  %v1666_v4 = vpack.c.bf16 %v379_v1, %v378_v0  ;;  %v363_v5 = vld [vmem:[#allocation6 + $0x8] sm:$0xff]  ;;  %s1888_s27 = smov 8   ;;  %s1889_s28 = smov 10  }
  0x45   : > { %s2540_s10 = smov (!%p351_p9, %s1970_s10), 1  ;;  %v381_v7 = vld [vmem:[#allocation6 + $0x98] sm:$0xff]  ;;  %v1668_v8 = vpack.c.bf16 %v363_v5, %v362_v2  ;;  %v364_v10 = vld [vmem:[#allocation6 + $0x10] sm:$0xff]  ;;  %v382_v12 = vld [vmem:[#allocation6 + $0xa0] sm:$0xff]  ;;  %v2051_v15 = vshrl.u32 %v478_v3, 7  ;;  %s1890_s29 = smov 17  }
  0x46   : > { %v1670_v9 = vpack.c.bf16 %v381_v7, %v380_v6  ;;  %v365_v11 = vld [vmem:[#allocation6 + $0x18] sm:$0xff]  ;;  %1667 = vmatprep.subr.bf16.mxu0 %v1666_v4  ;;  %v383_v13 = vld [vmem:[#allocation6 + $0xa8] sm:$0xff]  ;;  %s1610_s13 = sshll.u32 %s2540_s10, 3  ;;  %v366_v17 = vld [vmem:[#allocation6 + $0x20] sm:$0xff]  ;;  %v1891_v61 = vmov 0.0   ;;  %s1892_s11 = smov 9  }
  0x47   : > { %1669 = vmatpush3.bf16.msra.mxu0 %v1668_v8  ;;  %v1672_v14 = vpack.c.bf16 %v365_v11, %v364_v10  ;;  %v1674_v16 = vpack.c.bf16 %v383_v13, %v382_v12  ;;  %v367_v18 = vld [vmem:[#allocation6 + $0x28] sm:$0xff]  ;;  %v384_v19 = vld [vmem:[#allocation6 + $0xb0] sm:$0xff]  ;;  %v385_v20 = vld [vmem:[#allocation6 + $0xb8] sm:$0xff]  ;;  %s355_s23 = scalar_lea.vmem %s2517_s0, %s1610_s13  ;;  %v2057_v22 = vsub.s32 2, %v2051_v15  ;;  %v2076_v55 = vsub.s32 3, %v2051_v15  ;;  %789 = vst [vmem:[#allocation4] sm:$0xff] %v1891_v61  ;;  %782 = vmatprep.mubr.f32.mxu1 %v1891_v61 }
  0x48   : > { %1671 = vmatprep.subr.bf16.mxu0 %v1670_v9  ;;  %v1676_v21 = vpack.c.bf16 %v367_v18, %v366_v17  ;;  %v1678_v23 = vpack.c.bf16 %v385_v20, %v384_v19  ;;  %v368_v24 = vld [vmem:[#allocation6 + $0x30] sm:$0xff]  ;;  %v369_v25 = vld [vmem:[#allocation6 + $0x38] sm:$0xff]  ;;  %v386_v26 = vld [vmem:[#allocation6 + $0xc0] sm:$0xff]  ;;  %v2081_v57 = vsub.s32 5, %v2051_v15  ;;  %v2086_v59 = vsub.s32 7, %v2051_v15  ;;  %790 = vst [vmem:[#allocation4 + $0x8] sm:$0xff] %v1891_v61 }
  0x49   : > { %v387_v27 = vld [vmem:[#allocation6 + $0xc8] sm:$0xff]  ;;  %v1680_v31 = vpack.c.bf16 %v369_v25, %v368_v24  ;;  %v370_v34 = vld [vmem:[#allocation6 + $0x40] sm:$0xff]  ;;  %v388_v36 = vld [vmem:[#allocation6 + $0xd0] sm:$0xff]  ;;  %468 = vst.msk [vmem:[#allocation2] sm:$0xf] %vm467_vm0, %v1891_v61  ;;  %v2098_v63 = vsub.s32 1, %v2051_v15 }
  0x4a   : > { %v2059_v28 = vld [vmem:[%s355_s23] sm:$0xff]  ;;  %v1682_v33 = vpack.c.bf16 %v387_v27, %v386_v26  ;;  %v389_v37 = vld [vmem:[#allocation6 + $0xd8] sm:$0xff]  ;;  %v372_v40 = vld [vmem:[#allocation6 + $0x50] sm:$0xff]  ;;  %793 = vst [vmem:[#allocation4 + $0x18] sm:$0xf] %v1891_v61  ;;  %v2103_v3 = vsub.s32 4, %v2051_v15 }
  0x4b   : > { %1673 = vmatpush3.bf16.msra.mxu0 %v1672_v14  ;;  %v2063_v29 = vcombine.high %v2059_v28, %v2059_v28  ;;  %v2068_v30 = vld [vmem:[%s2520_s3] sm:$0xff]  ;;  %v1686_v39 = vpack.c.bf16 %v389_v37, %v388_v36  ;;  %v373_v41 = vld [vmem:[#allocation6 + $0x58] sm:$0xff]  ;;  %v392_v48 = vld [vmem:[#allocation6 + $0xf0] sm:$0xff]  ;;  %794 = vst [vmem:[#allocation4 + $0x20] sm:$0xf] %v1891_v61  ;;  %s1893_s14 = smov 1  }
  0x4c   : > { %1675 = vmatprep.subr.bf16.mxu0 %v1674_v16  ;;  %v504_v32 = vrot.slane %v2068_v30, %v2057_v22  ;;  %v371_v35 = vld [vmem:[#allocation6 + $0x48] sm:$0xff]  ;;  %v390_v42 = vld [vmem:[#allocation6 + $0xe0] sm:$0xff]  ;;  %v1688_v44 = vpack.c.bf16 %v373_v41, %v372_v40  ;;  %v393_v49 = vld [vmem:[#allocation6 + $0xf8] sm:$0xff]  ;;  %v519_v56 = vrot.slane %v2068_v30, %v2076_v55  ;;  %v549_v58 = vrot.slane %v2068_v30, %v2081_v57  ;;  %s1894_s17 = smov 16   ;;  %s1895_s20 = smov 18  }
  0x4d   : > { %461 = vmatprep.mubr.f32.mxu0 %v2063_v29  ;;  %v1684_v38 = vpack.c.bf16 %v371_v35, %v370_v34  ;;  %v391_v43 = vld [vmem:[#allocation6 + $0xe8] sm:$0xff]  ;;  %v374_v46 = vld [vmem:[#allocation6 + $0x60] sm:$0xff]  ;;  %v1694_v51 = vpack.c.bf16 %v393_v49, %v392_v48  ;;  %v376_v52 = vld [vmem:[#allocation6 + $0x70] sm:$0xff]  ;;  %v579_v60 = vrot.slane %v2068_v30, %v2086_v59  ;;  %v489_v2 = vrot.slane %v2068_v30, %v2098_v63  ;;  %s1896_s12 = smov 127   ;;  %s1897_s21 = smov 126  }
  0x4e   : > { %506 = vrot.lane.b32.xlu1 %v504_v32, %s1887_s26  ;;  %v1690_v45 = vpack.c.bf16 %v391_v43, %v390_v42  ;;  %v375_v47 = vld [vmem:[#allocation6 + $0x68] sm:$0xff]  ;;  %v377_v53 = vld [vmem:[#allocation6 + $0x78] sm:$0xff]  ;;  %v534_v4 = vrot.slane %v2068_v30, %v2103_v3  ;;  %v2109_v5 = vsub.s32 6, %v2051_v15  ;;  %vm473_vm1 = vcmask 592968   ;;  %s1899_s22 = smov 120   ;;  %s1900_s13 = smov 119  }
  0x4f   : > { %1677 = vmatpush3.bf16.msra.mxu0 %v1676_v21  ;;  %v1692_v50 = vpack.c.bf16 %v375_v47, %v374_v46  ;;  %v1696_v54 = vpack.c.bf16 %v377_v53, %v376_v52  ;;  %v1599_v7 = vld [vmem:[%s2520_s3 + $0x8] ss:$0 sm:$0xff]  ;;  %v2119_v10 = vsub.s32 0, %v2051_v15  ;;  %vm483_vm2 = vcmask 519168   ;;  %s1901_s15 = smov 118   ;;  %s1902_s16 = smov 112  }
  0x50   : > { %1679 = vmatprep.subr.bf16.mxu0 %v1678_v23  ;;  %v564_v6 = vrot.slane %v2068_v30, %v2109_v5  ;;  %v1898_v25 = vmov 0.0|0.0   ;;  %s1903_s23 = smov 111   ;;  %s2529_s24 = smov 110   ;;  %vm1905_vm3 = vmmov 0   ;;  %v611_v41 = vld [vmem:[%s2519_s2] sm:$0xff]  ;;  %v699_v42 = vld [vmem:[%s2522_s5 + $0x8] sm:$0xff] }
  0x51   : > { %v481_v12 = vrot.slane %v2068_v30, %v2119_v10  ;;  %v701_v43 = vld [vmem:[%s2522_s5 + $0x18] sm:$0xff]  ;;  %v698_v46 = vld [vmem:[%s2522_s5] sm:$0xff]  ;;  %v700_v47 = vld [vmem:[%s2522_s5 + $0x10] sm:$0xff]  ;;  %vm621_vm4 = vcmask 1043456   ;;  %vm617_vm5 = vcmask 293888   ;;  %vm714_vm7 = vcmask 523264  }
  0x52   : > { %521 = vrot.lane.b32.xlu1 %v519_v56, %s1888_s27  ;;  %v703_v48 = vld [vmem:[%s2522_s5 + $0x28] sm:$0xff]  ;;  %v1706_v49 = vpack.c.bf16 %v700_v47, %v698_v46  ;;  %v704_v52 = vld [vmem:[%s2522_s5 + $0x30] sm:$0xff]  ;;  %v709_v56 = vld [vmem:[%s2522_s5 + $0x58] sm:$0xff]  ;;  %vm791_vm8 = vcmask 277504   ;;  %vm809_vm9 = vcmask 134144   ;;  %vm801_vm10 = vcmask 138240  }
  0x53   : > { %1681 = vmatpush3.bf16.msra.mxu0 %v1680_v31  ;;  %vm806_vm11 = vcmask 1043592   ;;  %792 = vst.msk [vmem:[#allocation4 + $0x10] sm:$0xff] %vm791_vm8, %v1891_v61  ;;  %vm795_vm12 = vcmask 273408   ;;  %vm823_vm13 = vcmask 1047692   ;;  %vm826_vm14 = vcmask 138244   ;;  %s1611_s18 = sshll.u32 %s2540_s10, 4 }
  0x54   : > { %1683 = vmatprep.subr.bf16.mxu0 %v1682_v33  ;;  %796 = vst.msk [vmem:[#allocation4 + $0x28] sm:$0xf] %vm795_vm12, %v1891_v61  ;;  %vm946_vm15 = vcmask 15360   ;;  %vm1211_vm0 = vcmask 261120   ;;  %vm1178_vm12 = vcmask 900096  }
  0x56   : > { %551 = vrot.lane.b32.xlu1 %v549_v58, %s1889_s28  ;;  %s1909_s28 = smov 34  }
  0x57   : > { %1685 = vmatpush3.bf16.msra.mxu0 %v1684_v38 }
  0x58   : > { %1687 = vmatprep.subr.bf16.mxu0 %v1686_v39 }
  0x5a   : > { %581 = vrot.lane.b32.xlu1 %v579_v60, %s1890_s29 }
  0x5b   : > { %1689 = vmatpush3.bf16.msra.mxu0 %v1688_v44  ;;  %v1906_v44 = vmov 0  }
  0x5c   : > { %1691 = vmatprep.subr.bf16.mxu0 %v1690_v45  ;;  %1808 = vset.pattern.permute.xlu1 %v1906_v44  ;;  %v1704_v45 = vpack.c.bf16 %v701_v43, %v699_v42 }
  0x5d   : > { %1809 = vset.pattern.permute.xlu0 %v1906_v44 }
  0x5e   : > { %1705 = vmatprep.subr.bf16.mxu1 %v1704_v45 }
  0x5f   : > { %1693 = vmatpush3.bf16.msra.mxu0 %v1692_v50  ;;  %v705_v50 = vld [vmem:[%s2522_s5 + $0x38] sm:$0xff]  ;;  %1707 = vmatpush1.bf16.msra.mxu1 %v1706_v49 }
  0x60   : > { %1695 = vmatprep.subr.bf16.mxu0 %v1694_v51  ;;  %v702_v51 = vld [vmem:[%s2522_s5 + $0x20] sm:$0xff]  ;;  %v1708_v53 = vpack.c.bf16 %v705_v50, %v703_v48 }
  0x61   : > { %v1710_v58 = vpack.c.bf16 %v704_v52, %v702_v51 }
  0x62   : > { %1709 = vmatprep.subr.bf16.mxu1 %v1708_v53 }
  0x63   : > { %1697 = vmatpush3.bf16.msra.mxu0 %v1696_v54  ;;  %v707_v54 = vld [vmem:[%s2522_s5 + $0x48] sm:$0xff]  ;;  %1711 = vmatpush1.bf16.msra.mxu1 %v1710_v58 }
  0x64   : > { %1698 = vmatprep.subr.bf16.mxu0 %v1898_v25  ;;  %v1712_v60 = vpack.c.bf16 %v709_v56, %v707_v54 }
  0x66   : > { %462 = vmatmul.mubr.f32.vlgmr.msra.gmra.mrb[0].mxu0 %v2059_v28  ;;  %1713 = vmatprep.subr.bf16.mxu1 %v1712_v60 }
  0x67   : > { %1663 = vmatprep.mubr.msk.f32.mxu0 %vm1905_vm3, %v1891_v61  ;;  %vm1273_vm3 = vcmask 269312  }
  0xc0   : > { %v507_v8 = vpop.permute.xlu1 %506 }
  0xc4   : > { %v522_v13 = vpop.permute.xlu1 %521 }
  0xc8   : > { %v552_v15 = vpop.permute.xlu1 %551 }
  0xcc   : > { %v582_v34 = vpop.permute.xlu1 %581 }
 0x139   : > { %v1644_v62 = vpop.f32.mrb[0].mxu0 }
 0x13a   : > { %v1645_v0 = vpop.f32.mrb[1].mxu0 }
 0x13b   : > { %v1646_v1 = vadd.f32 %v1645_v0, %v1644_v62  ;;  %v706_v62 = vld [vmem:[%s2522_s5 + $0x40] sm:$0xff]  ;;  %v708_v0 = vld [vmem:[%s2522_s5 + $0x50] sm:$0xff] }
 0x13d   : > { %470 = vrot.lane.b32.xlu0 %v1646_v1, %s1892_s11  ;;  %v1714_v1 = vpack.c.bf16 %v708_v0, %v706_v62 }
 0x13f   : > { %1715 = vmatpush1.bf16.msra.mxu1 %v1714_v1 }
 0x141   : > { %491 = vrot.lane.b32.xlu0 %v489_v2, %s1893_s14 }
 0x145   : > { %536 = vrot.lane.b32.xlu0 %v534_v4, %s1892_s11  ;;  %s1912_s11 = smov 94  }
 0x149   : > { %566 = vrot.lane.b32.xlu0 %v564_v6, %s1894_s17 }
 0x14d   : > { %596 = vrot.lane.b32.xlu0 %v1599_v7, %s1895_s20 }
 0x1af   : > { %v471_v9 = vpop.permute.xlu0 %470 }
 0x1b0   : > { %474 = vst.msk [vmem:[#allocation2] sm:$0xf] %vm473_vm1, %v471_v9  ;;  %vm1008_vm1 = vcmask 130048  }
 0x1b3   : > { %v492_v11 = vpop.permute.xlu0 %491 }
 0x1b7   : > { %v477_v14 = vld [vmem:[#allocation2] sm:$0xf]  ;;  %v537_v17 = vpop.permute.xlu0 %536 }
 0x1b8   : > { %v485_v16 = vld [vmem:[#allocation2] sm:$0xf]  ;;  %v482_v18 = vmul.f32 %v481_v12, %v477_v14 }
 0x1b9   : > { %v494_v19 = vmul.f32 %v492_v11, %v485_v16  ;;  %v500_v20 = vld [vmem:[#allocation2] sm:$0xf] }
 0x1ba   : > { %v509_v21 = vmul.f32 %v507_v8, %v500_v20  ;;  %v515_v23 = vld [vmem:[#allocation2] sm:$0xf]  ;;  %484 = vst.msk [vmem:[#allocation3] sm:$0xf] %vm483_vm2, %v482_v18  ;;  %v711_v20 = vld [vmem:[%s2522_s5 + $0x68] sm:$0xff] }
 0x1bb   : > { %v530_v24 = vld [vmem:[#allocation2] sm:$0xf]  ;;  %496 = vrot.lane.b32.xlu1 %v494_v19, %s1896_s12  ;;  %v567_v26 = vpop.permute.xlu0 %566  ;;  %v524_v27 = vmul.f32 %v522_v13, %v515_v23 }
 0x1bc   : > { %511 = vrot.lane.b32.xlu0 %v509_v21, %s1897_s21  ;;  %v545_v30 = vld [vmem:[#allocation2] sm:$0xf]  ;;  %v539_v31 = vmul.f32 %v537_v17, %v530_v24  ;;  %v713_v21 = vld [vmem:[%s2522_s5 + $0x78] sm:$0xff] }
 0x1bd   : > { %v554_v32 = vmul.f32 %v552_v15, %v545_v30  ;;  %v560_v33 = vld [vmem:[#allocation2] sm:$0xf]  ;;  %v1716_v23 = vpack.c.bf16 %v713_v21, %v711_v20  ;;  %v712_v15 = vld [vmem:[%s2522_s5 + $0x70] sm:$0xff] }
 0x1be   : > { %v575_v35 = vld [vmem:[#allocation2] sm:$0xf]  ;;  %v569_v36 = vmul.f32 %v567_v26, %v560_v33  ;;  %v2203_v26 = vld [vmem:[%s2525_s8 + $0x8] sm:$0xff] }
 0x1bf   : > { %526 = vrot.lane.b32.xlu1 %v524_v27, %s1899_s22  ;;  %v597_v37 = vpop.permute.xlu0 %596  ;;  %v584_v38 = vmul.f32 %v582_v34, %v575_v35  ;;  %v590_v39 = vld [vmem:[#allocation2] sm:$0xf]  ;;  %1717 = vmatprep.subr.bf16.mxu1 %v1716_v23  ;;  %v868_v30 = vrot.slane %v2203_v26, %v2098_v63  ;;  %v1001_v34 = vrot.slane %v2203_v26, %v2076_v55 }
 0x1c0   : > { %541 = vrot.lane.b32.xlu0 %v539_v31, %s1900_s13  ;;  %v599_v40 = vmul.f32 %v597_v37, %v590_v39  ;;  %v605_v18 = vld [vmem:[%s2518_s1] sm:$0xff]  ;;  %v1133_v35 = vrot.slane %v2203_v26, %v2081_v57  ;;  %v1204_v37 = vrot.slane %v2203_v26, %v2109_v5  ;;  %s360_s13 = scalar_lea.vmem %s2526_s9, %s1611_s18 }
 0x1c1   : > { %v710_v24 = vld [vmem:[%s2522_s5 + $0x60] sm:$0xff] }
 0x1c2   : > { %v2208_v27 = vld [vmem:[%s2525_s8] sm:$0xff] }
 0x1c3   : > { %556 = vrot.lane.b32.xlu1 %v554_v32, %s1901_s15  ;;  %v864_v31 = vrot.slane %v2208_v27, %v2098_v63  ;;  %v939_v32 = vrot.slane %v2203_v26, %v2057_v22  ;;  %v935_v33 = vrot.slane %v2208_v27, %v2057_v22  ;;  %v997_v63 = vrot.slane %v2208_v27, %v2076_v55 }
 0x1c4   : > { %571 = vrot.lane.b32.xlu0 %v569_v36, %s1902_s16  ;;  %v1129_v22 = vrot.slane %v2208_v27, %v2081_v57  ;;  %v1072_v36 = vrot.slane %v2203_v26, %v2103_v3  ;;  %v1068_v55 = vrot.slane %v2208_v27, %v2103_v3  ;;  %v1200_v57 = vrot.slane %v2208_v27, %v2109_v5  ;;  %v1604_v3 = vld [vmem:[%s2525_s8 + $0x18] ss:$0 sm:$0xff]  ;;  %v1603_v5 = vld [vmem:[%s2525_s8 + $0x10] ss:$0 sm:$0xff] }
 0x1c5   : > { %v1262_v39 = vrot.slane %v2208_v27, %v2086_v59 }
 0x1c7   : > { %586 = vrot.lane.b32.xlu1 %v584_v38, %s1903_s23  ;;  %v1266_v38 = vrot.slane %v2203_v26, %v2086_v59 }
 0x1c8   : > { %601 = vrot.lane.b32.xlu0 %v599_v40, %s2529_s24 }
 0x1cb   : > { %614 = vperm.xlu1 %1808, %v611_v41  }
 0x1cc   : > { %797 = vrot.lane.b32.xlu0 %v2059_v28, %s1890_s29 }
 0x1cf   : > { %799 = vrot.lane.b32.xlu1 %v2063_v29, %s1890_s29 }
 0x1d0   : > { %871 = vrot.lane.b32.xlu0 %v864_v31, %s1893_s14 }
 0x1d3   : > { %873 = vrot.lane.b32.xlu1 %v868_v30, %s1893_s14  ;;  %s1908_s14 = smov 33  }
 0x1d4   : > { %942 = vrot.lane.b32.xlu0 %v935_v33, %s1887_s26 }
 0x1d7   : > { %944 = vrot.lane.b32.xlu1 %v939_v32, %s1887_s26  ;;  %s1907_s26 = smov 32  }
 0x1d8   : > { %1004 = vrot.lane.b32.xlu0 %v997_v63, %s1894_s17 }
 0x1db   : > { %1006 = vrot.lane.b32.xlu1 %v1001_v34, %s1894_s17 }
 0x1dc   : > { %1136 = vrot.lane.b32.xlu0 %v1129_v22, %s1895_s20 }
 0x1df   : > { %1138 = vrot.lane.b32.xlu1 %v1133_v35, %s1895_s20 }
 0x1e0   : > { %1075 = vrot.lane.b32.xlu0 %v1068_v55, %s1890_s29 }
 0x1e3   : > { %1077 = vrot.lane.b32.xlu1 %v1072_v36, %s1890_s29 }
 0x1e4   : > { %1207 = vrot.lane.b32.xlu0 %v1200_v57, %s1907_s26 }
 0x1e7   : > { %1209 = vrot.lane.b32.xlu1 %v1204_v37, %s1907_s26 }
 0x1e8   : > { %1269 = vrot.lane.b32.xlu0 %v1262_v39, %s1908_s14 }
 0x1eb   : > { %1271 = vrot.lane.b32.xlu1 %v1266_v38, %s1908_s14 }
 0x1ec   : > { %1340 = vrot.lane.b32.xlu0 %v1603_v5, %s1909_s28 }
 0x1ef   : > { %1342 = vrot.lane.b32.xlu1 %v1604_v3, %s1909_s28 }
 0x22d   : > { %v497_v28 = vpop.permute.xlu1 %496 }
 0x22e   : > { %499 = vst.msk [vmem:[#allocation3 + $0x4] sm:$0xf] %vm483_vm2, %v497_v28  ;;  %v512_v2 = vpop.permute.xlu0 %511 }
 0x22f   : > { %514 = vst.msk [vmem:[#allocation3 + $0x8] sm:$0xf] %vm483_vm2, %v512_v2 }
 0x231   : > { %v527_v4 = vpop.permute.xlu1 %526 }
 0x232   : > { %529 = vst.msk [vmem:[#allocation3 + $0xc] sm:$0xf] %vm483_vm2, %v527_v4  ;;  %v542_v6 = vpop.permute.xlu0 %541 }
 0x233   : > { %544 = vst.msk [vmem:[#allocation3 + $0x10] sm:$0xf] %vm483_vm2, %v542_v6 }
 0x235   : > { %v557_v7 = vpop.permute.xlu1 %556  ;;  %v606_v9 = vld [vmem:[#allocation3] sm:$0xff] }
 0x236   : > { %559 = vst.msk [vmem:[#allocation3 + $0x14] sm:$0xf] %vm483_vm2, %v557_v7  ;;  %v572_v29 = vpop.permute.xlu0 %571 }
 0x237   : > { %574 = vst.msk [vmem:[#allocation3 + $0x18] sm:$0xf] %vm483_vm2, %v572_v29 }
 0x239   : > { %v587_v8 = vpop.permute.xlu1 %586  ;;  %v607_v11 = vld [vmem:[#allocation3 + $0x8] sm:$0xff] }
 0x23a   : > { %589 = vst.msk [vmem:[#allocation3 + $0x1c] sm:$0xf] %vm483_vm2, %v587_v8  ;;  %v602_v12 = vpop.permute.xlu0 %601  ;;  %v1699_v13 = vpack.c.bf16 %v607_v11, %v606_v9 }
 0x23b   : > { %604 = vst.msk [vmem:[#allocation3 + $0x20] sm:$0xf] %vm483_vm2, %v602_v12  ;;  %v842_v12 = vrot.slane %v2208_v27, %v2119_v10  ;;  %vm875_vm2 = vcmask 7168  }
 0x23c   : > { %1700 = vmatpush3.bf16.msra.mxu0 %v1699_v13  ;;  %v846_v13 = vrot.slane %v2203_v26, %v2119_v10 }
 0x23d   : > { %1701 = vmatprep.subr.bf16.mxu0 %v1898_v25  ;;  %v608_v14 = vld [vmem:[#allocation3 + $0x10] sm:$0xff]  ;;  %v1718_v25 = vpack.c.bf16 %v712_v15, %v710_v24 }
 0x23e   : > { %v798_v46 = vpop.permute.xlu0 %797 }
 0x23f   : > { %1719 = vmatpush1.bf16.msra.mxu1 %v1718_v25  ;;  %807 = vst.msk [vmem:[#allocation4] sm:$0xf] %vm806_vm11, %v798_v46 }
 0x241   : > { %v609_v16 = vld [vmem:[#allocation3 + $0x18] sm:$0xff] }
 0x242   : > { %v1702_v17 = vpack.c.bf16 %v609_v16, %v608_v14  ;;  %v610_v19 = vld [vmem:[#allocation3 + $0x20] sm:$0xf]  ;;  %v2263_v52 = vpop.permute.xlu0 %871 }
 0x244   : > { %1703 = vmatpush3.bf16.msra.mxu0 %v1702_v17 }
 0x245   : > { %1661 = vmatprep.subr.mxu0 %v1891_v61 }
 0x246   : > { %v2267_v54 = vpop.permute.xlu0 %942 }
 0x248   : > { %1662 = vmatpush3.msk.msra.mxu0 %vm621_vm4, %v610_v19 }
 0x249   : > { %1664 = vmatmul.mubr.msk.f32.vlgmr.msra.gmra.mrb[2].mxu0 %vm617_vm5, %v605_v18  ;;  %vm1140_vm5 = vcmask 146432  }
 0x24a   : > { %v615_v40 = vpop.permute.xlu1 %614  ;;  %v2271_v58 = vpop.permute.xlu0 %1004 }
 0x24e   : > { %v800_v45 = vpop.permute.xlu1 %799 }
 0x24f   : > { %v802_v47 = vsel %vm801_vm10, %v798_v46, %v800_v45  ;;  %810 = vst.msk [vmem:[#allocation4 + $0x10] sm:$0xf] %vm809_vm9, %v800_v45 }
 0x250   : > { %808 = vst [vmem:[#allocation4 + $0x8] sm:$0xf] %v802_v47 }
 0x252   : > { %v2265_v53 = vpop.permute.xlu1 %873 }
 0x256   : > { %v2269_v56 = vpop.permute.xlu1 %944 }
 0x257   : > { %v947_v37 = vsel %vm946_vm15, %v2267_v54, %v2269_v56 }
 0x25a   : > { %v2273_v60 = vpop.permute.xlu1 %1006 }
 0x25e   : > { %v2277_v62 = vpop.permute.xlu1 %1138 }
 0x262   : > { %v2281_v1 = vpop.permute.xlu1 %1077 }
 0x266   : > { %v2285_v2 = vpop.permute.xlu1 %1209 }
 0x26a   : > { %v2289_v6 = vpop.permute.xlu1 %1271 }
 0x26e   : > { %v2293_v29 = vpop.permute.xlu1 %1342 }
 0x31c   : > { %v691_v41 = vpop.f32.mrb[2].mxu0 }
 0x31d   : > { %v692_v42 = vadd.f32 %v691_v41, %v615_v40  ;;  %v1665_v43 = vpop.f32.mrb[3].mxu0 }
 0x31f   : > { %vm695_vm6 = vcmp.ge.f32.partialorder %v692_v42, 0.0  ;;  %v696_v59 = vmul.f32 0.2, %v692_v42 }
 0x321   : > { %v697_v44 = vsel %vm695_vm6, %v692_v42, %v696_v59  ;;  %vm975_vm6 = vcmask 1031168  }
 0x322   : > { %1602 = vmatmul.mubr.msk.f32.vlgmr.msra.gmra.mrb[0].mxu1 %vm714_vm7, %v697_v44  ;;  %vm1240_vm7 = vcmask 785408  }
 0x323   : > { %1494 = vmatprep.mubr.f32.mxu1 %v1891_v61  ;;  %v2275_v61 = vpop.permute.xlu0 %1136 }
 0x327   : > { %v2279_v0 = vpop.permute.xlu0 %1075 }
 0x32b   : > { %v2283_v28 = vpop.permute.xlu0 %1207 }
 0x32c   : > { %v1212_v42 = vsel %vm1211_vm0, %v2283_v28, %v2285_v2  ;;  %vm1420_vm0 = vcmask 883712  }
 0x32f   : > { %v2287_v4 = vpop.permute.xlu0 %1269 }
 0x333   : > { %v2291_v7 = vpop.permute.xlu0 %1340 }
 0x3f5   : > { %v784_v48 = vpop.f32.mrb[0].mxu1 }
 0x3f6   : > { %v813_v49 = vrot.slane %v784_v48, 4  ;;  %v786_v50 = vpop.f32.mrb[1].mxu1 }
 0x3f7   : > { %v814_v51 = vrot.slane %v786_v50, 4 }
 0x3f8   : > { %815 = vrot.lane.b32.xlu0 %v813_v49, %s1890_s29 }
 0x3f9   : > { %817 = vrot.lane.b32.xlu1 %v814_v51, %s1890_s29  ;;  %s1910_s29 = smov 96  }
 0x46a   : > { %v816_v8 = vpop.permute.xlu0 %815 }
 0x46b   : > { %824 = vst.msk [vmem:[#allocation4] sm:$0xf0] %vm823_vm13, %v816_v8  ;;  %v818_v9 = vpop.permute.xlu1 %817  ;;  %vm1372_vm13 = vcmask 769024  }
 0x46c   : > { %828 = vst.msk [vmem:[#allocation4 + $0x18] sm:$0xf] %vm806_vm11, %v816_v8  ;;  %v819_v11 = vsel %vm801_vm10, %v816_v8, %v818_v9  ;;  %vm913_vm11 = vcmask 1039360  }
 0x46d   : > { %827 = vst.msk [vmem:[#allocation4 + $0x10] sm:$0xf0] %vm826_vm14, %v818_v9  ;;  %825 = vst [vmem:[#allocation4 + $0x20] ss:$-20 sps:$4 sm:$0xff] %v819_v11   ;;  %vm1913_vm14 = vmmov 1  }
 0x46e   : > { %830 = vst.msk [vmem:[#allocation4 + $0x28] sm:$0xf] %vm809_vm9, %v818_v9  ;;  %vm1046_vm9 = vcmask 916480   ;;  %vm1745_vm15 = vmpackc.low %vm621_vm4, %vm1913_vm14 }
 0x472   : > { %v2302_v14 = vld [vmem:[#allocation4] sm:$0xff] }
 0x473   : > { %v837_v16 = vld [vmem:[#allocation4 + $0x18] sm:$0xf]  ;;  %v2305_v18 = vmul.f32 %v842_v12, %v2302_v14  ;;  %v951_v21 = vmul.f32 %v2267_v54, %v2302_v14  ;;  %v1083_v27 = vmul.f32 %v2279_v0, %v2302_v14  ;;  %v1216_v32 = vmul.f32 %v2283_v28, %v2302_v14 }
 0x474   : > { %v929_v17 = vld [vmem:[#allocation4 + $0x18] sm:$0xf]  ;;  %v849_v19 = vmul.f32 %v842_v12, %v837_v16  ;;  %v2310_v23 = vld [vmem:[#allocation4 + $0x8] sm:$0xff]  ;;  %v838_v24 = vld [vmem:[#allocation4 + $0x20] sm:$0xf]  ;;  %v880_v41 = vmul.f32 %v2263_v52, %v2302_v14  ;;  %v1013_v44 = vmul.f32 %v2271_v58, %v2302_v14  ;;  %v1145_v12 = vmul.f32 %v2275_v61, %v2302_v14 }
 0x475   : > { %v954_v20 = vmul.f32 %v2267_v54, %v929_v17  ;;  %v1062_v15 = vld [vmem:[#allocation4 + $0x18] sm:$0xf]  ;;  %v2313_v10 = vmul.f32 %v846_v13, %v2310_v23  ;;  %v850_v25 = vmul.f32 %v846_v13, %v838_v24  ;;  %963 = vrot.lane.b32.xlu0 %v951_v21, %s1897_s21  ;;  %v2325_v33 = vld [vmem:[#allocation4 + $0x10] sm:$0xff]  ;;  %v1064_v35 = vld [vmem:[#allocation4 + $0x28] sm:$0xf]  ;;  %v952_v38 = vmul.f32 %v947_v37, %v2310_v23 }
 0x476   : > { %853 = vst [vmem:[#allocation5 + $0x10] sm:$0xf] %v849_v19  ;;  %v1086_v26 = vmul.f32 %v2279_v0, %v1062_v15  ;;  %v1194_v30 = vld [vmem:[#allocation4 + $0x18] sm:$0xf]  ;;  %v1085_v34 = vmul.f32 %v2281_v1, %v2325_v33  ;;  %v953_v63 = vmul.f32 %v2325_v33, %v2269_v56  ;;  %v931_v22 = vld [vmem:[#allocation4 + $0x28] sm:$0xf]  ;;  %v1088_v36 = vmul.f32 %v2281_v1, %v1064_v35 }
 0x477   : > { %969 = vrot.lane.b32.xlu1 %v954_v20, %s1897_s21  ;;  %854 = vst [vmem:[#allocation5 + $0x18] sm:$0xf] %v850_v25  ;;  %v1219_v31 = vmul.f32 %v2283_v28, %v1194_v30  ;;  %v956_v55 = vmul.f32 %v2269_v56, %v931_v22  ;;  %v1218_v57 = vmul.f32 %v2285_v2, %v2325_v33  ;;  %v1196_v39 = vld [vmem:[#allocation4 + $0x28] sm:$0xf]  ;;  %v930_v3 = vld [vmem:[#allocation4 + $0x20] sm:$0xf] }
 0x478   : > { %v1221_v5 = vmul.f32 %v2285_v2, %v1196_v39  ;;  %v955_v40 = vmul.f32 %v947_v37, %v930_v3  ;;  %v892_v43 = vrot.slane %v880_v41, 4  ;;  %v1217_v59 = vmul.f32 %v1212_v42, %v2310_v23  ;;  %v1195_v45 = vld [vmem:[#allocation4 + $0x20] sm:$0xf]  ;;  %v858_v46 = vld [vmem:[#allocation4 + $0x18] sm:$0xf] }
 0x479   : > { %1095 = vrot.lane.b32.xlu0 %v1083_v27, %s1903_s23  ;;  %v1025_v47 = vrot.slane %v1013_v44, 4  ;;  %v1220_v48 = vmul.f32 %v1212_v42, %v1195_v45  ;;  %v2360_v49 = vmul.f32 %v2325_v33, %v2265_v53  ;;  %v883_v50 = vmul.f32 %v2263_v52, %v858_v46  ;;  %v991_v51 = vld [vmem:[#allocation4 + $0x18] sm:$0xf]  ;;  %v1063_v2 = vld [vmem:[#allocation4 + $0x20] sm:$0xf] }
 0x47a   : > { %v1079_v54 = vsel %vm801_vm10, %v2279_v0, %v2281_v1  ;;  %v1016_v9 = vmul.f32 %v2271_v58, %v991_v51  ;;  %v1123_v13 = vld [vmem:[#allocation4 + $0x18] sm:$0xf]  ;;  %v1157_v16 = vrot.slane %v1145_v12, 4  ;;  %v1278_v17 = vmul.f32 %v2287_v4, %v2302_v14  ;;  %v992_v44 = vld [vmem:[#allocation4 + $0x20] sm:$0xf] }
 0x47b   : > { %1101 = vrot.lane.b32.xlu1 %v1086_v26, %s1903_s23  ;;  %v1084_v56 = vmul.f32 %v1079_v54, %v2310_v23  ;;  %v894_v28 = vrot.slane %v2360_v49, 4  ;;  %v895_v8 = vrot.slane %v883_v50, 4  ;;  %v1087_v11 = vmul.f32 %v1079_v54, %v1063_v2  ;;  %v1256_v24 = vld [vmem:[#allocation4 + $0x18] sm:$0xf]  ;;  %v1258_v12 = vld [vmem:[#allocation4 + $0x28] sm:$0xf] }
 0x47c   : > { %v1028_v1 = vrot.slane %v1016_v9, 4  ;;  %v2384_v19 = vmul.f32 %v2277_v62, %v2325_v33  ;;  %v1148_v21 = vmul.f32 %v2275_v61, %v1123_v13  ;;  %v1290_v15 = vrot.slane %v1278_v17, 4 }
 0x47d   : > { %1228 = vrot.lane.b32.xlu0 %v1216_v32, %s1910_s29  ;;  %v896_v0 = vsel %vm621_vm4, %v892_v43, %v895_v8  ;;  %v1281_v27 = vmul.f32 %v2287_v4, %v1256_v24  ;;  %v2399_v30 = vsel %vm791_vm8, %v2291_v7, %v2293_v29  ;;  %v1015_v32 = vmul.f32 %v2325_v33, %v2273_v60 }
 0x47e   : > { %v1029_v20 = vsel %vm621_vm4, %v1025_v47, %v1028_v1  ;;  %v1159_v25 = vrot.slane %v2384_v19, 4  ;;  %v1160_v26 = vrot.slane %v1148_v21, 4  ;;  %v1009_v35 = vsel %vm1008_vm1, %v2271_v58, %v2273_v60 }
 0x47f   : > { %1234 = vrot.lane.b32.xlu1 %v1219_v31, %s1910_s29  ;;  %v1349_v31 = vmul.f32 %v2399_v30, %v2310_v23  ;;  %v1027_v22 = vrot.slane %v1015_v32, 4  ;;  %v876_v39 = vsel %vm875_vm2, %v2263_v52, %v2265_v53  ;;  %v1274_v58 = vsel %vm1273_vm3, %v2287_v4, %v2289_v6 }
 0x480   : > { %v881_v41 = vmul.f32 %v876_v39, %v2310_v23  ;;  %v1141_v2 = vsel %vm1140_vm5, %v2275_v61, %v2277_v62  ;;  %v1350_v13 = vmul.f32 %v2293_v29, %v2325_v33  ;;  %vm1107_vm8 = vcmask 908288  }
 0x481   : > { %967 = vrot.lane.b32.xlu0 %v953_v63, %s1897_s21  ;;  %v1293_v63 = vrot.slane %v1281_v27, 4  ;;  %v1146_v8 = vmul.f32 %v1141_v2, %v2310_v23  ;;  %v1327_v27 = vld [vmem:[#allocation4 + $0x18] sm:$0xf]  ;;  %vm1311_vm10 = vcmask 777216  }
 0x482   : > { %v893_v52 = vrot.slane %v881_v41, 4  ;;  %v1351_v32 = vmul.f32 %v2291_v7, %v1327_v27 }
 0x483   : > { %1099 = vrot.lane.b32.xlu1 %v1085_v34, %s1903_s23  ;;  %v1161_v34 = vsel %vm621_vm4, %v1157_v16, %v1160_v26  ;;  %v1294_v37 = vsel %vm621_vm4, %v1290_v15, %v1293_v63  ;;  %v1158_v1 = vrot.slane %v1146_v8, 4  ;;  %v1329_v26 = vld [vmem:[#allocation4 + $0x28] sm:$0xf] }
 0x485   : > { %973 = vrot.lane.b32.xlu0 %v956_v55, %s1897_s21  ;;  %v1014_v55 = vmul.f32 %v1009_v35, %v2310_v23 }
 0x487   : > { %1105 = vrot.lane.b32.xlu1 %v1088_v36, %s1903_s23  ;;  %v1280_v36 = vmul.f32 %v2289_v6, %v2325_v33 }
 0x489   : > { %1232 = vrot.lane.b32.xlu0 %v1218_v57, %s1910_s29  ;;  %v860_v57 = vld [vmem:[#allocation4 + $0x28] sm:$0xf]  ;;  %v1292_v3 = vrot.slane %v1280_v36, 4 }
 0x48a   : > { %v885_v42 = vmul.f32 %v2265_v53, %v860_v57 }
 0x48b   : > { %965 = vrot.lane.b32.xlu1 %v952_v38, %s1897_s21  ;;  %v859_v38 = vld [vmem:[#allocation4 + $0x20] sm:$0xf] }
 0x48c   : > { %v899_v46 = vrot.slane %v885_v42, 4 }
 0x48d   : > { %1238 = vrot.lane.b32.xlu0 %v1221_v5, %s1910_s29  ;;  %v1026_v5 = vrot.slane %v1014_v55, 4 }
 0x48e   : > { %v900_v53 = vsel %vm621_vm4, %v894_v28, %v899_v46 }
 0x48f   : > { %971 = vrot.lane.b32.xlu1 %v955_v40, %s1897_s21  ;;  %s2538_s21 = smov 110   ;;  %v1279_v40 = vmul.f32 %v1274_v58, %v2310_v23  ;;  %v1283_v23 = vmul.f32 %v2289_v6, %v1258_v12 }
 0x491   : > { %901 = vrot.lane.b32.xlu0 %v892_v43, %s1896_s12  ;;  %v884_v43 = vmul.f32 %v876_v39, %v859_v38  ;;  %v1291_v45 = vrot.slane %v1279_v40, 4  ;;  %v1297_v21 = vrot.slane %v1283_v23, 4 }
 0x493   : > { %1230 = vrot.lane.b32.xlu1 %v1217_v59, %s1910_s29  ;;  %v993_v59 = vld [vmem:[#allocation4 + $0x28] sm:$0xf]  ;;  %v1298_v33 = vsel %vm621_vm4, %v1292_v3, %v1297_v21 }
 0x494   : > { %v1018_v4 = vmul.f32 %v2273_v60, %v993_v59  ;;  %v1124_v60 = vld [vmem:[#allocation4 + $0x20] sm:$0xf] }
 0x495   : > { %1034 = vrot.lane.b32.xlu0 %v1025_v47, %s1902_s16  ;;  %v897_v47 = vrot.slane %v884_v43, 4 }
 0x496   : > { %v1032_v51 = vrot.slane %v1018_v4, 4 }
 0x497   : > { %1236 = vrot.lane.b32.xlu1 %v1220_v48, %s1910_s29  ;;  %v1017_v48 = vmul.f32 %v1009_v35, %v992_v44  ;;  %v898_v50 = vsel %vm621_vm4, %v893_v52, %v897_v47 }
 0x498   : > { %v1033_v9 = vsel %vm621_vm4, %v1027_v22, %v1032_v51 }
 0x499   : > { %1097 = vrot.lane.b32.xlu0 %v1084_v56, %s1903_s23  ;;  %v1030_v54 = vrot.slane %v1017_v48, 4  ;;  %v1125_v56 = vld [vmem:[#allocation4 + $0x28] sm:$0xf] }
 0x49b   : > { %905 = vrot.lane.b32.xlu1 %v894_v28, %s1896_s12  ;;  %v1031_v49 = vsel %vm621_vm4, %v1026_v5, %v1030_v54  ;;  %v1150_v28 = vmul.f32 %v2277_v62, %v1125_v56 }
 0x49d   : > { %1103 = vrot.lane.b32.xlu0 %v1087_v11, %s1903_s23  ;;  %s1911_s23 = smov 95   ;;  %v1149_v11 = vmul.f32 %v1141_v2, %v1124_v60  ;;  %v1164_v61 = vrot.slane %v1150_v28, 4 }
 0x49f   : > { %907 = vrot.lane.b32.xlu1 %v896_v0, %s1896_s12  ;;  %v1257_v0 = vld [vmem:[#allocation4 + $0x20] sm:$0xf]  ;;  %v1165_v62 = vsel %vm621_vm4, %v1159_v25, %v1164_v61 }
 0x4a0   : > { %v1282_v17 = vmul.f32 %v1274_v58, %v1257_v0 }
 0x4a1   : > { %1166 = vrot.lane.b32.xlu0 %v1157_v16, %s2538_s21  ;;  %v1162_v16 = vrot.slane %v1149_v11, 4 }
 0x4a2   : > { %v1295_v24 = vrot.slane %v1282_v17, 4 }
 0x4a3   : > { %1040 = vrot.lane.b32.xlu1 %v1029_v20, %s1902_s16  ;;  %v1163_v20 = vsel %vm621_vm4, %v1158_v1, %v1162_v16 }
 0x4a4   : > { %v1296_v6 = vsel %vm621_vm4, %v1291_v45, %v1295_v24 }
 0x4a5   : > { %1299 = vrot.lane.b32.xlu0 %v1290_v15, %s1911_s23  ;;  %v1328_v15 = vld [vmem:[#allocation4 + $0x20] sm:$0xf] }
 0x4a6   : > { %v1352_v19 = vmul.f32 %v2399_v30, %v1328_v15  ;;  %v1414_v30 = vld [vmem:[%s2524_s7] sm:$0xff] }
 0x4a7   : > { %1170 = vrot.lane.b32.xlu1 %v1159_v25, %s2538_s21  ;;  %v1353_v25 = vmul.f32 %v2293_v29, %v1329_v26 }
 0x4a9   : > { %1362 = vrot.lane.b32.xlu0 %v1349_v31, %s1912_s11  ;;  %v1348_v31 = vmul.f32 %v2291_v7, %v2302_v14 }
 0x4ab   : > { %1172 = vrot.lane.b32.xlu1 %v1161_v34, %s2538_s21 }
 0x4ad   : > { %1038 = vrot.lane.b32.xlu0 %v1027_v22, %s1902_s16 }
 0x4af   : > { %1305 = vrot.lane.b32.xlu1 %v1294_v37, %s1911_s23 }
 0x4b1   : > { %1303 = vrot.lane.b32.xlu0 %v1292_v3, %s1911_s23 }
 0x4b3   : > { %1036 = vrot.lane.b32.xlu1 %v1026_v5, %s1902_s16 }
 0x4b5   : > { %903 = vrot.lane.b32.xlu0 %v893_v52, %s1896_s12 }
 0x4b7   : > { %1301 = vrot.lane.b32.xlu1 %v1291_v45, %s1911_s23 }
 0x4b9   : > { %911 = vrot.lane.b32.xlu0 %v900_v53, %s1896_s12 }
 0x4bb   : > { %909 = vrot.lane.b32.xlu1 %v898_v50, %s1896_s12 }
 0x4bd   : > { %1044 = vrot.lane.b32.xlu0 %v1033_v9, %s1902_s16 }
 0x4bf   : > { %1042 = vrot.lane.b32.xlu1 %v1031_v49, %s1902_s16 }
 0x4c1   : > { %1168 = vrot.lane.b32.xlu0 %v1158_v1, %s2538_s21 }
 0x4c3   : > { %1364 = vrot.lane.b32.xlu1 %v1350_v13, %s1912_s11 }
 0x4c5   : > { %1176 = vrot.lane.b32.xlu0 %v1165_v62, %s2538_s21 }
 0x4c7   : > { %1174 = vrot.lane.b32.xlu1 %v1163_v20, %s2538_s21 }
 0x4c9   : > { %1309 = vrot.lane.b32.xlu0 %v1298_v33, %s1911_s23 }
 0x4cb   : > { %1307 = vrot.lane.b32.xlu1 %v1296_v6, %s1911_s23 }
 0x4cd   : > { %1368 = vrot.lane.b32.xlu0 %v1352_v19, %s1912_s11 }
 0x4cf   : > { %1370 = vrot.lane.b32.xlu1 %v1353_v25, %s1912_s11 }
 0x4d1   : > { %1360 = vrot.lane.b32.xlu0 %v1348_v31, %s1912_s11 }
 0x4d3   : > { %1366 = vrot.lane.b32.xlu1 %v1351_v32, %s1912_s11 }
 0x4d5   : > { %1417 = vperm.xlu0 %1809, %v1414_v30  }
 0x4e7   : > { %v964_v34 = vpop.permute.xlu0 %963 }
 0x4e9   : > { %v970_v29 = vpop.permute.xlu1 %969 }
 0x4eb   : > { %v1096_v35 = vpop.permute.xlu0 %1095 }
 0x4ed   : > { %v1102_v63 = vpop.permute.xlu1 %1101 }
 0x4ef   : > { %v1229_v36 = vpop.permute.xlu0 %1228 }
 0x4f1   : > { %v1235_v22 = vpop.permute.xlu1 %1234 }
 0x4f3   : > { %v968_v37 = vpop.permute.xlu0 %967 }
 0x4f5   : > { %v1100_v55 = vpop.permute.xlu1 %1099 }
 0x4f7   : > { %v974_v57 = vpop.permute.xlu0 %973 }
 0x4f9   : > { %v1106_v14 = vpop.permute.xlu1 %1105 }
 0x4fb   : > { %v1233_v7 = vpop.permute.xlu0 %1232 }
 0x4fd   : > { %v966_v38 = vpop.permute.xlu1 %965 }
 0x4fe   : > { %v2469_v39 = vsel %vm975_vm6, %v964_v34, %v966_v38  ;;  %v2471_v58 = vsel %vm975_vm6, %v966_v38, %v968_v37 }
 0x4ff   : > { %v1239_v3 = vpop.permute.xlu0 %1238 }
 0x501   : > { %v972_v5 = vpop.permute.xlu1 %971 }
 0x502   : > { %v978_v40 = vsel %vm975_vm6, %v970_v29, %v972_v5  ;;  %v979_v41 = vsel %vm975_vm6, %v972_v5, %v974_v57 }
 0x503   : > { %986 = vst [vmem:[#allocation5 + $0x40] sm:$0xf] %v978_v40  ;;  %987 = vst [vmem:[#allocation5 + $0x48] sm:$0xf] %v979_v41  ;;  %v902_v42 = vpop.permute.xlu0 %901 }
 0x505   : > { %v1231_v43 = vpop.permute.xlu1 %1230 }
 0x506   : > { %v2473_v59 = vsel %vm1240_vm7, %v1229_v36, %v1231_v43  ;;  %v2475_v44 = vsel %vm1240_vm7, %v1231_v43, %v1233_v7 }
 0x507   : > { %v1035_v45 = vpop.permute.xlu0 %1034 }
 0x509   : > { %v1237_v52 = vpop.permute.xlu1 %1236 }
 0x50a   : > { %v1243_v46 = vsel %vm1240_vm7, %v1235_v22, %v1237_v52  ;;  %v1244_v47 = vsel %vm1240_vm7, %v1237_v52, %v1239_v3 }
 0x50b   : > { %1251 = vst [vmem:[#allocation5 + $0xa0] sm:$0xf] %v1243_v46  ;;  %1252 = vst [vmem:[#allocation5 + $0xa8] sm:$0xf] %v1244_v47  ;;  %v1098_v4 = vpop.permute.xlu0 %1097 }
 0x50c   : > { %v2477_v53 = vsel %vm1107_vm8, %v1096_v35, %v1098_v4  ;;  %v2479_v50 = vsel %vm1107_vm8, %v1098_v4, %v1100_v55 }
 0x50d   : > { %v906_v48 = vpop.permute.xlu1 %905 }
 0x50f   : > { %v1104_v51 = vpop.permute.xlu0 %1103 }
 0x510   : > { %v1110_v56 = vsel %vm1107_vm8, %v1102_v63, %v1104_v51  ;;  %v1111_v60 = vsel %vm1107_vm8, %v1104_v51, %v1106_v14 }
 0x511   : > { %v908_v54 = vpop.permute.xlu1 %907  ;;  %1118 = vst [vmem:[#allocation5 + $0x70] sm:$0xf] %v1110_v56  ;;  %1119 = vst [vmem:[#allocation5 + $0x78] sm:$0xf] %v1111_v60 }
 0x513   : > { %v1167_v2 = vpop.permute.xlu0 %1166 }
 0x515   : > { %v1041_v8 = vpop.permute.xlu1 %1040 }
 0x517   : > { %v1300_v9 = vpop.permute.xlu0 %1299 }
 0x519   : > { %v1171_v49 = vpop.permute.xlu1 %1170 }
 0x51b   : > { %v2481_v28 = vpop.permute.xlu0 %1362 }
 0x51d   : > { %v1173_v11 = vpop.permute.xlu1 %1172 }
 0x51f   : > { %v1039_v12 = vpop.permute.xlu0 %1038 }
 0x521   : > { %v1306_v0 = vpop.permute.xlu1 %1305 }
 0x523   : > { %v1304_v1 = vpop.permute.xlu0 %1303 }
 0x525   : > { %v1037_v13 = vpop.permute.xlu1 %1036 }
 0x526   : > { %v1047_v61 = vsel %vm1046_vm9, %v1035_v45, %v1037_v13  ;;  %v1048_v16 = vsel %vm1046_vm9, %v1037_v13, %v1039_v12 }
 0x527   : > { %1055 = vst [vmem:[#allocation5 + $0x40] sm:$0xf0] %v1047_v61  ;;  %1056 = vst [vmem:[#allocation5 + $0x48] sm:$0xf0] %v1048_v16  ;;  %v904_v17 = vpop.permute.xlu0 %903 }
 0x528   : > { %v914_v21 = vsel %vm913_vm11, %v902_v42, %v904_v17  ;;  %v915_v24 = vsel %vm913_vm11, %v904_v17, %v906_v48 }
 0x529   : > { %v1302_v23 = vpop.permute.xlu1 %1301  ;;  %922 = vst [vmem:[#allocation5 + $0x10] sm:$0xf0] %v914_v21  ;;  %923 = vst [vmem:[#allocation5 + $0x18] sm:$0xf0] %v915_v24 }
 0x52a   : > { %v1312_v62 = vsel %vm1311_vm10, %v1300_v9, %v1302_v23  ;;  %v1313_v20 = vsel %vm1311_vm10, %v1302_v23, %v1304_v1 }
 0x52b   : > { %1320 = vst [vmem:[#allocation5 + $0xa0] sm:$0xf0] %v1312_v62  ;;  %1321 = vst [vmem:[#allocation5 + $0xa8] sm:$0xf0] %v1313_v20  ;;  %v912_v33 = vpop.permute.xlu0 %911 }
 0x52d   : > { %v910_v6 = vpop.permute.xlu1 %909 }
 0x52e   : > { %v916_v15 = vsel %vm913_vm11, %v908_v54, %v910_v6  ;;  %v917_v26 = vsel %vm913_vm11, %v910_v6, %v912_v33  ;;  %v1395_v14 = vld [vmem:[#allocation5 + $0x48] sm:$0xff]  ;;  %v1394_v3 = vld [vmem:[#allocation5 + $0x40] sm:$0xff] }
 0x52f   : > { %v1045_v19 = vpop.permute.xlu0 %1044  ;;  %v1724_v22 = vpack.c.bf16 %v2471_v58, %v917_v26 }
 0x530   : > { %v1389_v32 = vld [vmem:[#allocation5 + $0x18] sm:$0xff]  ;;  %v1388_v30 = vld [vmem:[#allocation5 + $0x10] sm:$0xff] }
 0x531   : > { %v1043_v25 = vpop.permute.xlu1 %1042  ;;  %v1720_v29 = vpack.c.bf16 %v1389_v32, %v2313_v10  ;;  %v1722_v34 = vpack.c.bf16 %v1388_v30, %v2305_v18  ;;  %v1726_v10 = vpack.c.bf16 %v2469_v39, %v916_v15 }
 0x532   : > { %v1049_v27 = vsel %vm1046_vm9, %v1041_v8, %v1043_v25  ;;  %v1050_v31 = vsel %vm1046_vm9, %v1043_v25, %v1045_v19  ;;  %v1407_v56 = vld [vmem:[#allocation5 + $0xa8] sm:$0xff] }
 0x533   : > { %v1169_v63 = vpop.permute.xlu0 %1168  ;;  %1721 = vmatprep.subr.bf16.mxu1 %v1720_v29  ;;  %v1728_v7 = vpack.c.bf16 %v1050_v31, %v1395_v14  ;;  %v1730_v5 = vpack.c.bf16 %v1049_v27, %v1394_v3 }
 0x534   : > { %v1179_v36 = vsel %vm1178_vm12, %v1167_v2, %v1169_v63  ;;  %v1180_v55 = vsel %vm1178_vm12, %v1169_v63, %v1171_v49  ;;  %1723 = vmatpush1.bf16.msra.mxu1 %v1722_v34 }
 0x535   : > { %v1365_v35 = vpop.permute.xlu1 %1364  ;;  %1187 = vst [vmem:[#allocation5 + $0x70] sm:$0xf0] %v1179_v36  ;;  %1188 = vst [vmem:[#allocation5 + $0x78] sm:$0xf0] %v1180_v55  ;;  %1725 = vmatprep.subr.bf16.mxu1 %v1724_v22 }
 0x536   : > { %v1374_v37 = vsel %vm1372_vm13, %v2481_v28, %v1365_v35 }
 0x537   : > { %v1177_v18 = vpop.permute.xlu0 %1176 }
 0x538   : > { %1727 = vmatpush1.bf16.msra.mxu1 %v1726_v10 }
 0x539   : > { %v1175_v57 = vpop.permute.xlu1 %1174  ;;  %1729 = vmatprep.subr.bf16.mxu1 %v1728_v7 }
 0x53a   : > { %v1181_v38 = vsel %vm1178_vm12, %v1173_v11, %v1175_v57  ;;  %v1182_v58 = vsel %vm1178_vm12, %v1175_v57, %v1177_v18 }
 0x53b   : > { %v1310_v40 = vpop.permute.xlu0 %1309  ;;  %v1736_v48 = vpack.c.bf16 %v2475_v44, %v1182_v58  ;;  %v1738_v54 = vpack.c.bf16 %v2473_v59, %v1181_v38  ;;  %v1406_v44 = vld [vmem:[#allocation5 + $0xa0] sm:$0xff] }
 0x53c   : > { %1731 = vmatpush1.bf16.msra.mxu1 %v1730_v5  ;;  %v1401_v39 = vld [vmem:[#allocation5 + $0x78] sm:$0xff]  ;;  %v1400_v45 = vld [vmem:[#allocation5 + $0x70] sm:$0xff] }
 0x53d   : > { %v1308_v41 = vpop.permute.xlu1 %1307  ;;  %v1732_v52 = vpack.c.bf16 %v1401_v39, %v2479_v50  ;;  %v1734_v46 = vpack.c.bf16 %v1400_v45, %v2477_v53 }
 0x53e   : > { %v1314_v42 = vsel %vm1311_vm10, %v1306_v0, %v1308_v41  ;;  %v1315_v43 = vsel %vm1311_vm10, %v1308_v41, %v1310_v40  ;;  %v1385_v0 = vld [vmem:[#allocation8] sm:$0xff] }
 0x53f   : > { %v1369_v47 = vpop.permute.xlu0 %1368  ;;  %1733 = vmatprep.subr.bf16.mxu1 %v1732_v52  ;;  %v1740_v8 = vpack.c.bf16 %v1315_v43, %v1407_v56  ;;  %v1742_v9 = vpack.c.bf16 %v1314_v42, %v1406_v44 }
 0x540   : > { %1735 = vmatpush1.bf16.msra.mxu1 %v1734_v46 }
 0x541   : > { %v1371_v4 = vpop.permute.xlu1 %1370  ;;  %1737 = vmatprep.subr.bf16.mxu1 %v1736_v48 }
 0x542   : > { %v1376_v51 = vsel %vm1372_vm13, %v1369_v47, %v1371_v4 }
 0x543   : > { %1384 = vst [vmem:[#allocation5 + $0xd8] sm:$0xf] %v1376_v51  ;;  %v1361_v60 = vpop.permute.xlu0 %1360 }
 0x544   : > { %v1373_v50 = vsel %vm1372_vm13, %v1361_v60, %v2481_v28  ;;  %1739 = vmatpush1.bf16.msra.mxu1 %v1738_v54 }
 0x545   : > { %v1367_v2 = vpop.permute.xlu1 %1366  ;;  %1741 = vmatprep.subr.bf16.mxu1 %v1740_v8 }
 0x546   : > { %v1375_v53 = vsel %vm1372_vm13, %v1367_v2, %v1369_v47 }
 0x547   : > { %1383 = vst [vmem:[#allocation5 + $0xd0] sm:$0xf] %v1375_v53 }
 0x548   : > { %1743 = vmatpush1.bf16.msra.mxu1 %v1742_v9 }
 0x54a   : > { %v1413_v49 = vld [vmem:[#allocation5 + $0xd8] sm:$0xf] }
 0x54b   : > { %v1744_v59 = vpack.c.bf16 %v1413_v49, %v1374_v37 }
 0x54d   : > { %1746 = vmatprep.subr.msk.bf16.mxu1 %vm1745_vm15, %v1744_v59 }
 0x54e   : > { %v1412_v11 = vld [vmem:[#allocation5 + $0xd0] sm:$0xf] }
 0x54f   : > { %v1747_v12 = vpack.c.bf16 %v1412_v11, %v1373_v50 }
 0x551   : > { %1749 = vmatpush1.bf16.msk.msra.mxu1 %vm1745_vm15, %v1747_v12 }
 0x554   : > { %1607 = vmatmul.mubr.msk.f32.vlgmr.msra.gmra.mrb[2].mxu1 %vm1420_vm0, %v1385_v0  ;;  %v1418_v28 = vpop.permute.xlu0 %1417 }
 0x627   : > { %v1496_v1 = vpop.f32.mrb[2].mxu1 }
 0x628   : > { %v1497_v13 = vadd.f32 %v1496_v1, %v1418_v28  ;;  %v1498_v61 = vpop.f32.mrb[3].mxu1 }
 0x629   : > { %v1499_v16 = vadd.f32 %v1498_v61, %v1418_v28 }
 0x62a   : > { %vm1501_vm1 = vcmp.ge.f32.partialorder %v1497_v13, 0.0  ;;  %v1503_v23 = vmul.f32 0.2, %v1497_v13 }
 0x62b   : > { %vm1502_vm4 = vcmp.ge.f32.partialorder %v1499_v16, 0.0  ;;  %v1504_v17 = vmul.f32 0.2, %v1499_v16 }
 0x62c   : > { %v1505_v62 = vsel %vm1501_vm1, %v1497_v13, %v1503_v23 }
 0x62d   : > { %1507 = vst [vmem:[%s360_s13] sm:$0xff] %v1505_v62  ;;  %v1506_v20 = vsel %vm1502_vm4, %v1499_v16, %v1504_v17 }
 0x62e   : > { %1508 = vst [vmem:[%s360_s13 + $0x8] sm:$0xff] %v1506_v20 }
 0x62f PF: > { %s21_s30 = sadd.s32 1, %s1881_s30  }
 0x630   : > { %p18_p5 = scmp.ge.s32.totalorder %s21_s30, 4  }
 0x632   :  { %20 = sbr.rel (!%p18_p5) target bundleno = 2 (0x2), region = 95 }
 0x639   :  { %1530 = vsyncpa [#allocation7], 1 }
 0x63a   :  { %1532 = vsyncpa [#allocation7 + $0x1], 1 }
 0x63b   :  { %1533 = vsyncpa [#allocation9], 1 }

</bundles_post_ra>
